<compile_context>
chip_gen: v6e
topology: v6e:2x2x1
jax: 0.10.0
libtpu: 0.0.40
codegen_flags: <defaults>
</compile_context>

<pallas_src>
import functools

import numpy as np
import jax
import jax.numpy as jnp
from jax.experimental import pallas as pl
from jax.experimental.pallas import tpu as pltpu


def _round_up(v, m):
    return (v + m - 1) // m * m


_COMPILER_PARAMS = pltpu.CompilerParams(
    dimension_semantics=("parallel", "parallel"),
    vmem_limit_bytes=48 * 1024 * 1024,
)


def _tile_n(nout):
    # Exact N (no padding): every Cout in this net is either < 128 or a
    # multiple of 128.  Cap at 256 so wide layers expose >= 2 parallel tiles.
    if nout < 128:
        return nout
    return 256 if nout % 256 == 0 else 128


# ----------------------------------------------------------------------------
# Pallas kernels
# ----------------------------------------------------------------------------
def _mm_bias_act_kernel(x_ref, w_ref, b_ref, o_ref, *, relu):
    """Whole-K matmul + bias (+ReLU); bf16 in, f32 accumulate, bf16 out."""
    acc = jnp.dot(x_ref[...], w_ref[...], preferred_element_type=jnp.float32)
    acc = acc + b_ref[...]
    if relu:
        acc = jnp.maximum(acc, 0.0)
    o_ref[...] = acc.astype(o_ref.dtype)


def _conv_s1_kernel(x0_ref, x1_ref, w_ref, b_ref, o_ref, *, deltas, cin, relu):
    """Fused stride-1 kxk conv over a row-flattened padded NHWC activation.

    x0/x1 are two consecutive (TM, C) row blocks of the same flattened array;
    tap (a, b) needs rows shifted by delta = a*Wp + b (< TM), i.e.
    concat(x0[delta:], x1[:delta]).  k*k shifted matmuls accumulate in f32.
    """
    x0 = x0_ref[...]
    x1 = x1_ref[...]
    acc = None
    for t, d in enumerate(deltas):
        xw = x0 if d == 0 else jnp.concatenate([x0[d:], x1[:d]], axis=0)
        part = jnp.dot(xw, w_ref[t * cin:(t + 1) * cin, :],
                       preferred_element_type=jnp.float32)
        acc = part if acc is None else acc + part
    acc = acc + b_ref[...]
    if relu:
        acc = jnp.maximum(acc, 0.0)
    o_ref[...] = acc.astype(o_ref.dtype)


# ----------------------------------------------------------------------------
# Wrappers
# ----------------------------------------------------------------------------
def matmul_bias_act(x, wmat, bias2d, relu):
    """(M,K)bf16 @ (K,N)bf16 + bias[1,N]f32, optional ReLU -> (M,N) bf16."""
    m, k = x.shape
    nout = wmat.shape[1]
    tm = min(512 if k <= 2048 else 256, _round_up(m, 16))
    tn = _tile_n(nout)
    mp = _round_up(m, tm)
    if mp != m:
        x = jnp.pad(x, ((0, mp - m), (0, 0)))
    grid = (mp // tm, nout // tn)
    cost = pl.CostEstimate(
        flops=2 * mp * k * nout,
        transcendentals=0,
        bytes_accessed=2 * (mp * k + k * nout + mp * nout) + 4 * nout)
    out = pl.pallas_call(
        functools.partial(_mm_bias_act_kernel, relu=relu),
        out_shape=jax.ShapeDtypeStruct((mp, nout), jnp.bfloat16),
        grid=grid,
        in_specs=[
            pl.BlockSpec((tm, k), lambda i, j: (i, 0)),
            pl.BlockSpec((k, tn), lambda i, j: (0, j)),
            pl.BlockSpec((1, tn), lambda i, j: (0, j)),
        ],
        out_specs=pl.BlockSpec((tm, tn), lambda i, j: (i, j)),
        compiler_params=_COMPILER_PARAMS,
        cost_estimate=cost,
    )(x, wmat, bias2d)
    return out[:m] if mp != m else out


def conv2d_s1_fused(x, wmat, bias2d, k, pad, relu):
    """Stride-1 kxk conv (NHWC bf16 -> NHWC bf16) with in-kernel patching."""
    n, h, w, c = x.shape
    nout = wmat.shape[1]
    xp = jnp.pad(x, ((0, 0), (pad, pad), (pad, pad), (0, 0)))
    hp, wp = h + 2 * pad, w + 2 * pad
    ho, wo = hp - k + 1, wp - k + 1
    m = n * hp * wp
    deltas = tuple(a * wp + b for a in range(k) for b in range(k))
    dmax = deltas[-1]
    tm_cap = 1024 if c <= 256 else 512
    tm = max(min(tm_cap, _round_up(m, 16)), _round_up(dmax + 1, 16))
    tn = _tile_n(nout)
    mp = _round_up(m, tm)
    xf = xp.reshape(m, c)
    xf = jnp.pad(xf, ((0, mp + tm - m), (0, 0)))   # + one extra zero row block
    grid = (mp // tm, nout // tn)
    cost = pl.CostEstimate(
        flops=2 * mp * len(deltas) * c * nout,
        transcendentals=0,
        bytes_accessed=2 * (2 * mp * c + k * k * c * nout + mp * nout))
    out = pl.pallas_call(
        functools.partial(_conv_s1_kernel, deltas=deltas, cin=c, relu=relu),
        out_shape=jax.ShapeDtypeStruct((mp, nout), jnp.bfloat16),
        grid=grid,
        in_specs=[
            pl.BlockSpec((tm, c), lambda i, j: (i, 0)),       # row block i
            pl.BlockSpec((tm, c), lambda i, j: (i + 1, 0)),   # row block i+1
            pl.BlockSpec((k * k * c, tn), lambda i, j: (0, j)),
            pl.BlockSpec((1, tn), lambda i, j: (0, j)),
        ],
        out_specs=pl.BlockSpec((tm, tn), lambda i, j: (i, j)),
        compiler_params=_COMPILER_PARAMS,
        cost_estimate=cost,
    )(xf, xf, wmat, bias2d)
    out = out[:m].reshape(n, hp, wp, nout)
    return out[:, :ho, :wo, :]


def _im2col(x, k, stride, pad):
    n, h, w, c = x.shape
    xp = jnp.pad(x, ((0, 0), (pad, pad), (pad, pad), (0, 0)))
    hp, wp = h + 2 * pad, w + 2 * pad
    ho = (hp - k) // stride + 1
    wo = (wp - k) // stride + 1
    taps = []
    for a in range(k):
        for b in range(k):
            taps.append(xp[:, a:a + stride * (ho - 1) + 1:stride,
                            b:b + stride * (wo - 1) + 1:stride, :])
    pat = jnp.concatenate(taps, axis=-1)           # K ordered (a, b, cin)
    return pat.reshape(n * ho * wo, k * k * c), ho, wo


def conv2d_strided(x, wmat, bias2d, k, stride, pad, relu):
    # TODO(synk): the 6 stride-2 encoder convs still materialize an im2col
    # patch matrix; only stride-1 layers (and deconvs) use the fused kernel.
    n = x.shape[0]
    pat, ho, wo = _im2col(x, k, stride, pad)
    out = matmul_bias_act(pat, wmat, bias2d, relu)
    return out.reshape(n, ho, wo, -1)


def conv2d(x, wmat, bias2d, k, stride, pad, relu=True):
    if stride == 1:
        return conv2d_s1_fused(x, wmat, bias2d, k, pad, relu)
    return conv2d_strided(x, wmat, bias2d, k, stride, pad, relu)


def conv_transpose2d(x, wmat, bias2d, cout, relu=True):
    """PyTorch ConvTranspose2d(kernel=4, stride=2, padding=1).

    4-phase sub-pixel decomposition: one fused 2x2/stride-1 conv over the
    1-padded input with the 4 phase kernels stacked along N, then a single
    pass pixel-shuffle interleave (no zeros buffer, no strided scatters).
    """
    n, h, w, _ = x.shape
    out = conv2d_s1_fused(x, wmat, bias2d, 2, 1, relu)   # (n, h+1, w+1, 4*cout)
    out = out.reshape(n, h + 1, w + 1, 4, cout)
    p00 = out[:, 0:h, 0:w, 0, :]
    p01 = out[:, 0:h, 1:w + 1, 1, :]
    p10 = out[:, 1:h + 1, 0:w, 2, :]
    p11 = out[:, 1:h + 1, 1:w + 1, 3, :]
    ph = jnp.stack([p00, p01, p10, p11], axis=3).reshape(n, h, w, 2, 2, cout)
    return ph.transpose(0, 1, 3, 2, 4, 5).reshape(n, 2 * h, 2 * w, cout)


def upsample2x(x):
    # TODO(synk): F.interpolate(scale_factor=2, bilinear, align_corners=False)
    # stays in plain JAX (glue, tiny 1-channel maps); jax.image.resize uses
    # the same half-pixel convention.
    n, h, w, c = x.shape
    return jax.image.resize(x.astype(jnp.float32), (n, 2 * h, 2 * w, c),
                            method="bilinear")


def _up_pr8(p):
    """2x-upsampled 1-channel prediction, zero-padded to 8 channels (bf16)."""
    up = upsample2x(p).astype(jnp.bfloat16)
    return jnp.pad(up, ((0, 0), (0, 0), (0, 0), (0, 7)))


# ----------------------------------------------------------------------------
# Parameters: deterministic synthetic weights, laid out once for the kernels.
# ----------------------------------------------------------------------------
LAYERS = [
    ("conv_1", "conv", 3, 64, 7), ("conv_2", "conv", 64, 128, 5),
    ("conv_3a", "conv", 128, 256, 5), ("conv_3b", "conv", 256, 256, 3),
    ("conv_4a", "conv", 256, 512, 3), ("conv_4b", "conv", 512, 512, 3),
    ("conv_5a", "conv", 512, 512, 3), ("conv_5b", "conv", 512, 512, 3),
    ("conv_6a", "conv", 512, 1024, 3), ("conv_6b", "conv", 1024, 1024, 3),
    ("pr_6", "conv", 1024, 1, 3),
    ("up_conv_5", "convT", 1024, 512, 4), ("iconv5", "conv", 1025, 512, 3),
    ("pr_5", "conv", 512, 1, 3),
    ("up_conv_4", "convT", 512, 256, 4), ("iconv4", "conv", 769, 256, 3),
    ("pr_4", "conv", 256, 1, 3),
    ("up_conv_3", "convT", 256, 128, 4), ("iconv3", "conv", 385, 128, 3),
    ("pr_3", "conv", 128, 1, 3),
    ("up_conv_2", "convT", 128, 64, 4), ("iconv2", "conv", 193, 64, 3),
    ("pr_2", "conv", 64, 1, 3),
    ("up_conv_1", "convT", 64, 32, 4), ("iconv1", "conv", 97, 32, 3),
    ("pr_1", "conv", 32, 1, 3),
]
_KSIZE = {name: k for name, _, _, _, k in LAYERS}
_COUT = {name: cout for name, _, _, cout, _ in LAYERS}

_CT_TAPS = ((3, 1), (2, 0))   # output phase (even, odd) -> kernel tap indices


def _prep_conv_weight(w, extra_cin_pad=0):
    """(Cout,Cin,k,k) -> (k*k*(Cin+pad), Cout) bf16, rows ordered (a,b,cin)."""
    cout, cin, k, _ = w.shape
    wt = jnp.transpose(w, (2, 3, 1, 0))                       # (k,k,Cin,Cout)
    if extra_cin_pad:
        wt = jnp.pad(wt, ((0, 0), (0, 0), (0, extra_cin_pad), (0, 0)))
    return wt.reshape(k * k * (cin + extra_cin_pad), cout).astype(jnp.bfloat16)


def _prep_convT_weight(w):
    """(Cin,Cout,4,4) ConvTranspose weight -> (4*Cin, 4*Cout) phase matrix."""
    phase_cols = []
    for dh in (0, 1):
        for dw in (0, 1):
            rows = [w[:, :, _CT_TAPS[dh][a], _CT_TAPS[dw][b]]
                    for a in (0, 1) for b in (0, 1)]           # (Cin,Cout) each
            phase_cols.append(jnp.concatenate(rows, axis=0))   # (4*Cin, Cout)
    return jnp.concatenate(phase_cols, axis=1).astype(jnp.bfloat16)


def init_params(key):
    params = {}
    for name, kind, cin, cout, k in LAYERS:
        key, kw_, kb_ = jax.random.split(key, 3)
        std = 1.0 / (cin * k * k) ** 0.5
        bias = jax.random.normal(kb_, (cout,), jnp.float32) * std
        if kind == "conv":
            w = jax.random.normal(kw_, (cout, cin, k, k), jnp.float32) * std
            pad_cin = 7 if name.startswith("iconv") else 0   # pr map: 1->8 ch
            params[name] = (_prep_conv_weight(w, pad_cin),
                            bias.reshape(1, cout))
        else:
            w = jax.random.normal(kw_, (cin, cout, k, k), jnp.float32) * std
            params[name] = (_prep_convT_weight(w),
                            jnp.tile(bias, 4).reshape(1, 4 * cout))
    return params


# ----------------------------------------------------------------------------
# Forward pass (mirrors Model.forward; activations are bf16 NHWC internally)
# ----------------------------------------------------------------------------
def forward(params, x_nchw):
    x = jnp.transpose(x_nchw, (0, 2, 3, 1)).astype(jnp.bfloat16)
    _, h_in, w_in, _ = x.shape

    def C(name, t, stride, pad, relu=True):
        w, b = params[name]
        return conv2d(t, w, b, _KSIZE[name], stride, pad, relu)

    def CT(name, t):
        w, b = params[name]
        return conv_transpose2d(t, w, b, _COUT[name], relu=True)

    conv1 = C("conv_1", x, 2, 3)
    conv2 = C("conv_2", conv1, 2, 2)
    t = C("conv_3a", conv2, 2, 2)
    conv3b = C("conv_3b", t, 1, 1)
    t = C("conv_4a", conv3b, 2, 1)
    conv4b = C("conv_4b", t, 1, 1)
    t = C("conv_5a", conv4b, 2, 1)
    conv5b = C("conv_5b", t, 1, 1)
    t = C("conv_6a", conv5b, 2, 1)
    t = C("conv_6b", t, 1, 1)
    pr_6 = C("pr_6", t, 1, 1)
    # Original module asserts pr_6 is 6x12 (which pins a 384x768 input); kept
    # proportional so a smaller /64-divisible input also runs quickly.
    assert pr_6.shape[1] == h_in // 64 and pr_6.shape[2] == w_in // 64

    t = CT("up_conv_5", t)
    icon5 = C("iconv5", jnp.concatenate([t, conv5b, _up_pr8(pr_6)], axis=-1), 1, 1)
    pr_loss_5 = C("pr_5", icon5, 1, 1)

    t = CT("up_conv_4", icon5)
    iconv4 = C("iconv4", jnp.concatenate([t, conv4b, _up_pr8(pr_loss_5)], axis=-1), 1, 1)
    pr_loss_4 = C("pr_4", iconv4, 1, 1)

    t = CT("up_conv_3", iconv4)
    iconv3 = C("iconv3", jnp.concatenate([t, conv3b, _up_pr8(pr_loss_4)], axis=-1), 1, 1)
    pr_loss_3 = C("pr_3", iconv3, 1, 1)

    t = CT("up_conv_2", iconv3)
    iconv2 = C("iconv2", jnp.concatenate([t, conv2, _up_pr8(pr_loss_3)], axis=-1), 1, 1)
    pr_loss_2 = C("pr_2", iconv2, 1, 1)

    t = CT("up_conv_1", iconv2)
    iconv1 = C("iconv1", jnp.concatenate([t, conv1, _up_pr8(pr_loss_2)], axis=-1), 1, 1)
    pr_loss_1 = C("pr_1", iconv1, 1, 1, relu=False)

    scaled_up_pr_loss_1 = upsample2x(pr_loss_1)
    big = upsample2x(scaled_up_pr_loss_1)          # (N, 2*H, 2*W, 1)

    def to_nchw(a):
        return jnp.transpose(a.astype(jnp.float32), (0, 3, 1, 2))

    pr1 = to_nchw(pr_loss_1)
    metadata = {
        "pr_loss_1": pr1,
        "d_l": to_nchw(big[:, :h_in, :w_in, :]),
        "d_r": to_nchw(big[:, h_in:, w_in:, :]),
        "losses": [pr1, to_nchw(pr_loss_2), to_nchw(pr_loss_3),
                   to_nchw(pr_loss_4), to_nchw(pr_loss_5)],
    }
    return pr1, metadata


# ----------------------------------------------------------------------------
if __name__ == "__main__":
    key = jax.random.PRNGKey(0)
    kp, kx, kt = jax.random.split(key, 3)

    # --- Self-check 1: fused stride-1 conv kernel vs. the im2col path. -----
    k1, k2, k3 = jax.random.split(kt, 3)
    xa = jax.random.normal(k1, (1, 10, 14, 24), jnp.float32).astype(jnp.bfloat16)
    wa = jax.random.normal(k2, (16, 24, 3, 3), jnp.float32) * 0.1
    ba = jax.random.normal(k3, (16,), jnp.float32) * 0.1
    wmat_a = _prep_conv_weight(wa)
    b2_a = ba.reshape(1, 16)
    y_fused = conv2d_s1_fused(xa, wmat_a, b2_a, 3, 1, True)
    y_ref = conv2d_strided(xa, wmat_a, b2_a, 3, 1, 1, True)
    np.testing.assert_allclose(
        np.asarray(y_fused.astype(jnp.float32)),
        np.asarray(y_ref.astype(jnp.float32)), rtol=2e-2, atol=2e-2)

    # --- Self-check 2: ConvTranspose2d(4,2,1) phase decomposition vs. the
    #     literal PyTorch definition. -------------------------------------
    k4, k5, k6 = jax.random.split(k1, 3)
    xb = jax.random.normal(k4, (1, 5, 6, 8), jnp.float32)
    wb = jax.random.normal(k5, (8, 16, 4, 4), jnp.float32) * 0.1
    bb = jax.random.normal(k6, (16,), jnp.float32) * 0.1
    y_ct = conv_transpose2d(xb.astype(jnp.bfloat16), _prep_convT_weight(wb),
                            jnp.tile(bb, 4).reshape(1, 64), 16, relu=False)
    xn, wn, bn = np.asarray(xb), np.asarray(wb), np.asarray(bb)
    y_lit = np.zeros((1, 10, 12, 16), np.float32)
    for hh in range(5):
        for ww in range(6):
            for a in range(4):
                for b in range(4):
                    i, j = 2 * hh - 1 + a, 2 * ww - 1 + b
                    if 0 <= i < 10 and 0 <= j < 12:
                        y_lit[:, i, j, :] += xn[:, hh, ww, :] @ wn[:, :, a, b]
    y_lit += bn
    np.testing.assert_allclose(np.asarray(y_ct.astype(jnp.float32)), y_lit,
                               rtol=5e-2, atol=5e-2)

    # --- Full forward pass ------------------------------------------------
    params = init_params(kp)
    # H and W must be divisible by 64 (six stride-2 stages).  The original
    # targets 384x768; 64x128 keeps the 1:2 aspect at a fast-to-run size.
    N, H, W = 1, 64, 128
    x = jax.random.normal(kx, (N, 3, H, W), jnp.float32)

    fwd = jax.jit(forward)
    pr_loss_1, metadata = fwd(params, x)
    jax.block_until_ready(pr_loss_1)
    jax.block_until_ready(metadata["d_l"])
    jax.block_until_ready(metadata["d_r"])

    assert pr_loss_1.shape == (N, 1, H // 2, W // 2)
    assert metadata["d_l"].shape == (N, 1, H, W)
    assert metadata["d_r"].shape == (N, 1, H, W)
    assert len(metadata["losses"]) == 5
    print("KERNEL_OK")
</pallas_src>

<mosaic_0001>
module attributes {stable_mosaic.version = 11 : i64} {
  func.func @_conv_s1_kernel(%arg0: i32, %arg1: i32, %arg2: memref<192x24xbf16, #tpu.memory_space<vmem>>, %arg3: memref<192x24xbf16, #tpu.memory_space<vmem>>, %arg4: memref<216x16xbf16, #tpu.memory_space<vmem>>, %arg5: memref<1x16xf32, #tpu.memory_space<vmem>>, %arg6: memref<192x16xbf16, #tpu.memory_space<vmem>>) attributes {dimension_semantics = [#tpu.dimension_semantics<parallel>, #tpu.dimension_semantics<parallel>], iteration_bounds = array<i64: 1, 1>, scalar_prefetch = 0 : i64, scratch_operands = 0 : i64, tpu.core_type = #tpu.core_type<tc>, window_params = [{transform_indices = @transform_0, window_bounds = array<i64: 192, 24>}, {transform_indices = @transform_1, window_bounds = array<i64: 192, 24>}, {transform_indices = @transform_2, window_bounds = array<i64: 216, 16>}, {transform_indices = @transform_3, window_bounds = array<i64: 1, 16>}, {transform_indices = @transform_4, window_bounds = array<i64: 192, 16>}]} {
    %c0 = arith.constant 0 : index
    %c0_0 = arith.constant 0 : index
    %0 = vector.load %arg2[%c0, %c0_0] : memref<192x24xbf16, #tpu.memory_space<vmem>>, vector<192x24xbf16>
    %c0_1 = arith.constant 0 : index
    %c0_2 = arith.constant 0 : index
    %1 = vector.load %arg3[%c0_1, %c0_2] : memref<192x24xbf16, #tpu.memory_space<vmem>>, vector<192x24xbf16>
    %c0_3 = arith.constant 0 : index
    %c0_4 = arith.constant 0 : index
    %2 = vector.load %arg4[%c0_3, %c0_4] : memref<216x16xbf16, #tpu.memory_space<vmem>>, vector<24x16xbf16>
    %cst = arith.constant dense<0.000000e+00> : vector<192x16xf32>
    %3 = tpu.matmul %0, %2, %cst {dimension_numbers = #tpu.dot_dimension_numbers<[1], [0], [0], [1], [0, 0, 1, 1], [], []>} : vector<192x24xbf16>, vector<24x16xbf16>, vector<192x16xf32> -> vector<192x16xf32>
    %4 = vector.extract_strided_slice %0 {offsets = [1, 0], sizes = [191, 24], strides = [1, 1]} : vector<192x24xbf16> to vector<191x24xbf16>
    %5 = vector.extract_strided_slice %1 {offsets = [0, 0], sizes = [1, 24], strides = [1, 1]} : vector<192x24xbf16> to vector<1x24xbf16>
    %6 = tpu.concatenate %4, %5 in 0 : vector<191x24xbf16>, vector<1x24xbf16> -> vector<192x24xbf16>
    %c24 = arith.constant 24 : index
    %c0_5 = arith.constant 0 : index
    %7 = vector.load %arg4[%c24, %c0_5] : memref<216x16xbf16, #tpu.memory_space<vmem>>, vector<24x16xbf16>
    %cst_6 = arith.constant dense<0.000000e+00> : vector<192x16xf32>
    %8 = tpu.matmul %6, %7, %cst_6 {dimension_numbers = #tpu.dot_dimension_numbers<[1], [0], [0], [1], [0, 0, 1, 1], [], []>} : vector<192x24xbf16>, vector<24x16xbf16>, vector<192x16xf32> -> vector<192x16xf32>
    %9 = arith.addf %3, %8 : vector<192x16xf32>
    %10 = vector.extract_strided_slice %0 {offsets = [2, 0], sizes = [190, 24], strides = [1, 1]} : vector<192x24xbf16> to vector<190x24xbf16>
    %11 = vector.extract_strided_slice %1 {offsets = [0, 0], sizes = [2, 24], strides = [1, 1]} : vector<192x24xbf16> to vector<2x24xbf16>
    %12 = tpu.concatenate %10, %11 in 0 : vector<190x24xbf16>, vector<2x24xbf16> -> vector<192x24xbf16>
    %c48 = arith.constant 48 : index
    %c0_7 = arith.constant 0 : index
    %13 = vector.load %arg4[%c48, %c0_7] : memref<216x16xbf16, #tpu.memory_space<vmem>>, vector<24x16xbf16>
    %cst_8 = arith.constant dense<0.000000e+00> : vector<192x16xf32>
    %14 = tpu.matmul %12, %13, %cst_8 {dimension_numbers = #tpu.dot_dimension_numbers<[1], [0], [0], [1], [0, 0, 1, 1], [], []>} : vector<192x24xbf16>, vector<24x16xbf16>, vector<192x16xf32> -> vector<192x16xf32>
    %15 = arith.addf %9, %14 : vector<192x16xf32>
    %16 = vector.extract_strided_slice %0 {offsets = [16, 0], sizes = [176, 24], strides = [1, 1]} : vector<192x24xbf16> to vector<176x24xbf16>
    %17 = vector.extract_strided_slice %1 {offsets = [0, 0], sizes = [16, 24], strides = [1, 1]} : vector<192x24xbf16> to vector<16x24xbf16>
    %18 = tpu.concatenate %16, %17 in 0 : vector<176x24xbf16>, vector<16x24xbf16> -> vector<192x24xbf16>
    %c72 = arith.constant 72 : index
    %c0_9 = arith.constant 0 : index
    %19 = vector.load %arg4[%c72, %c0_9] : memref<216x16xbf16, #tpu.memory_space<vmem>>, vector<24x16xbf16>
    %cst_10 = arith.constant dense<0.000000e+00> : vector<192x16xf32>
    %20 = tpu.matmul %18, %19, %cst_10 {dimension_numbers = #tpu.dot_dimension_numbers<[1], [0], [0], [1], [0, 0, 1, 1], [], []>} : vector<192x24xbf16>, vector<24x16xbf16>, vector<192x16xf32> -> vector<192x16xf32>
    %21 = arith.addf %15, %20 : vector<192x16xf32>
    %22 = vector.extract_strided_slice %0 {offsets = [17, 0], sizes = [175, 24], strides = [1, 1]} : vector<192x24xbf16> to vector<175x24xbf16>
    %23 = vector.extract_strided_slice %1 {offsets = [0, 0], sizes = [17, 24], strides = [1, 1]} : vector<192x24xbf16> to vector<17x24xbf16>
    %24 = tpu.concatenate %22, %23 in 0 : vector<175x24xbf16>, vector<17x24xbf16> -> vector<192x24xbf16>
    %c96 = arith.constant 96 : index
    %c0_11 = arith.constant 0 : index
    %25 = vector.load %arg4[%c96, %c0_11] : memref<216x16xbf16, #tpu.memory_space<vmem>>, vector<24x16xbf16>
    %cst_12 = arith.constant dense<0.000000e+00> : vector<192x16xf32>
    %26 = tpu.matmul %24, %25, %cst_12 {dimension_numbers = #tpu.dot_dimension_numbers<[1], [0], [0], [1], [0, 0, 1, 1], [], []>} : vector<192x24xbf16>, vector<24x16xbf16>, vector<192x16xf32> -> vector<192x16xf32>
    %27 = arith.addf %21, %26 : vector<192x16xf32>
    %28 = vector.extract_strided_slice %0 {offsets = [18, 0], sizes = [174, 24], strides = [1, 1]} : vector<192x24xbf16> to vector<174x24xbf16>
    %29 = vector.extract_strided_slice %1 {offsets = [0, 0], sizes = [18, 24], strides = [1, 1]} : vector<192x24xbf16> to vector<18x24xbf16>
    %30 = tpu.concatenate %28, %29 in 0 : vector<174x24xbf16>, vector<18x24xbf16> -> vector<192x24xbf16>
    %c120 = arith.constant 120 : index
    %c0_13 = arith.constant 0 : index
    %31 = vector.load %arg4[%c120, %c0_13] : memref<216x16xbf16, #tpu.memory_space<vmem>>, vector<24x16xbf16>
    %cst_14 = arith.constant dense<0.000000e+00> : vector<192x16xf32>
    %32 = tpu.matmul %30, %31, %cst_14 {dimension_numbers = #tpu.dot_dimension_numbers<[1], [0], [0], [1], [0, 0, 1, 1], [], []>} : vector<192x24xbf16>, vector<24x16xbf16>, vector<192x16xf32> -> vector<192x16xf32>
    %33 = arith.addf %27, %32 : vector<192x16xf32>
    %34 = vector.extract_strided_slice %0 {offsets = [32, 0], sizes = [160, 24], strides = [1, 1]} : vector<192x24xbf16> to vector<160x24xbf16>
    %35 = vector.extract_strided_slice %1 {offsets = [0, 0], sizes = [32, 24], strides = [1, 1]} : vector<192x24xbf16> to vector<32x24xbf16>
    %36 = tpu.concatenate %34, %35 in 0 : vector<160x24xbf16>, vector<32x24xbf16> -> vector<192x24xbf16>
    %c144 = arith.constant 144 : index
    %c0_15 = arith.constant 0 : index
    %37 = vector.load %arg4[%c144, %c0_15] : memref<216x16xbf16, #tpu.memory_space<vmem>>, vector<24x16xbf16>
    %cst_16 = arith.constant dense<0.000000e+00> : vector<192x16xf32>
    %38 = tpu.matmul %36, %37, %cst_16 {dimension_numbers = #tpu.dot_dimension_numbers<[1], [0], [0], [1], [0, 0, 1, 1], [], []>} : vector<192x24xbf16>, vector<24x16xbf16>, vector<192x16xf32> -> vector<192x16xf32>
    %39 = arith.addf %33, %38 : vector<192x16xf32>
    %40 = vector.extract_strided_slice %0 {offsets = [33, 0], sizes = [159, 24], strides = [1, 1]} : vector<192x24xbf16> to vector<159x24xbf16>
    %41 = vector.extract_strided_slice %1 {offsets = [0, 0], sizes = [33, 24], strides = [1, 1]} : vector<192x24xbf16> to vector<33x24xbf16>
    %42 = tpu.concatenate %40, %41 in 0 : vector<159x24xbf16>, vector<33x24xbf16> -> vector<192x24xbf16>
    %c168 = arith.constant 168 : index
    %c0_17 = arith.constant 0 : index
    %43 = vector.load %arg4[%c168, %c0_17] : memref<216x16xbf16, #tpu.memory_space<vmem>>, vector<24x16xbf16>
    %cst_18 = arith.constant dense<0.000000e+00> : vector<192x16xf32>
    %44 = tpu.matmul %42, %43, %cst_18 {dimension_numbers = #tpu.dot_dimension_numbers<[1], [0], [0], [1], [0, 0, 1, 1], [], []>} : vector<192x24xbf16>, vector<24x16xbf16>, vector<192x16xf32> -> vector<192x16xf32>
    %45 = arith.addf %39, %44 : vector<192x16xf32>
    %46 = vector.extract_strided_slice %0 {offsets = [34, 0], sizes = [158, 24], strides = [1, 1]} : vector<192x24xbf16> to vector<158x24xbf16>
    %47 = vector.extract_strided_slice %1 {offsets = [0, 0], sizes = [34, 24], strides = [1, 1]} : vector<192x24xbf16> to vector<34x24xbf16>
    %48 = tpu.concatenate %46, %47 in 0 : vector<158x24xbf16>, vector<34x24xbf16> -> vector<192x24xbf16>
    %c192 = arith.constant 192 : index
    %c0_19 = arith.constant 0 : index
    %49 = vector.load %arg4[%c192, %c0_19] : memref<216x16xbf16, #tpu.memory_space<vmem>>, vector<24x16xbf16>
    %cst_20 = arith.constant dense<0.000000e+00> : vector<192x16xf32>
    %50 = tpu.matmul %48, %49, %cst_20 {dimension_numbers = #tpu.dot_dimension_numbers<[1], [0], [0], [1], [0, 0, 1, 1], [], []>} : vector<192x24xbf16>, vector<24x16xbf16>, vector<192x16xf32> -> vector<192x16xf32>
    %51 = arith.addf %45, %50 : vector<192x16xf32>
    %c0_21 = arith.constant 0 : index
    %c0_22 = arith.constant 0 : index
    %52 = vector.load %arg5[%c0_21, %c0_22] : memref<1x16xf32, #tpu.memory_space<vmem>>, vector<1x16xf32>
    %53 = vector.broadcast %52 : vector<1x16xf32> to vector<192x16xf32>
    %54 = arith.addf %51, %53 : vector<192x16xf32>
    %cst_23 = arith.constant 0.000000e+00 : f32
    %55 = vector.broadcast %cst_23 : f32 to vector<192x16xf32>
    %56 = arith.maximumf %54, %55 : vector<192x16xf32>
    %57 = arith.truncf %56 : vector<192x16xf32> to vector<192x16xbf16>
    %c0_24 = arith.constant 0 : index
    %c0_25 = arith.constant 0 : index
    %58 = vector.load %arg6[%c0_24, %c0_25] : memref<192x16xbf16, #tpu.memory_space<vmem>>, vector<192x16xbf16>
    tpu.vector_store %arg6[%c0_24, %c0_25], %57 {strides = array<i32>} : memref<192x16xbf16, #tpu.memory_space<vmem>>, vector<192x16xbf16>,
    return
  }
  func.func @transform_0(%arg0: i32, %arg1: i32) -> (i32, i32) {
    %c0_i32 = arith.constant 0 : i32
    %c0_i32_0 = arith.constant 0 : i32
    return %arg0, %c0_i32 : i32, i32
  }
  func.func @transform_1(%arg0: i32, %arg1: i32) -> (i32, i32) {
    %c1_i32 = arith.constant 1 : i32
    %0 = arith.addi %arg0, %c1_i32 : i32
    %c0_i32 = arith.constant 0 : i32
    %c0_i32_0 = arith.constant 0 : i32
    return %0, %c0_i32 : i32, i32
  }
  func.func @transform_2(%arg0: i32, %arg1: i32) -> (i32, i32) {
    %c0_i32 = arith.constant 0 : i32
    %c0_i32_0 = arith.constant 0 : i32
    return %c0_i32, %arg1 : i32, i32
  }
  func.func @transform_3(%arg0: i32, %arg1: i32) -> (i32, i32) {
    %c0_i32 = arith.constant 0 : i32
    %c0_i32_0 = arith.constant 0 : i32
    return %c0_i32, %arg1 : i32, i32
  }
  func.func @transform_4(%arg0: i32, %arg1: i32) -> (i32, i32) {
    %c0_i32 = arith.constant 0 : i32
    return %arg0, %arg1 : i32, i32
  }
}

</mosaic_0001>

<bundles_post_ra>
// kernel: tpu_custom_call.1
= control target key start
LH: loop header
LB: loop body
LE: loop exit
PB: predicated region body
PF: predicated region fallthrough
CT: control target
= control target key end

     0   :  { %vm289_vm0 = vcmask 1043456   ;;  %vm132_vm1 = vsmask.f32 7424  ;;  %vm252_vm2 = vcmask 195584   ;;  %vm237_vm3 = vcmask 1047552   ;;  %s3655_s2 = inlined_call_operand.vmem [shape: bf16[216,16], index: 2, kind: input, shape index: {}]   ;;  %s3656_s0 = inlined_call_operand.vmem [shape: bf16[384,24], index: 0, kind: input, shape index: {}]   ;;  %s3657_s1 = inlined_call_operand.vmem [shape: bf16[384,24], index: 1, kind: input, shape index: {}]   ;;  %s3658_s3 = inlined_call_operand.vmem [shape: f32[1,16], index: 3, kind: input, shape index: {}]   ;;  %s3659_s4 = inlined_call_operand.vmem [shape: bf16[192,16], index: 4, kind: output, shape index: {}]  }
   0x1   :  { %v2677_v0 = vld [vmem:[%s3655_s2 + $0x14] ss:$0 sps:$4 sm:$0xff]   ;;  %v2678_v1 = vld [vmem:[%s3655_s2 + $0xc] sm:$0xff]   ;;  %v2749_v3 = vld [vmem:[%s3656_s0] sm:$0xff]   ;;  %vm587_vm4 = vcmask 1046528   ;;  %vm2053_vm6 = vcmask 125952  }
   0x2   :  { %2667 = vmatprep.subr.msk.bf16.mxu0 %vm289_vm0, %v2677_v0  ;;  %2668 = vmatprep.subr.msk.bf16.mxu1 %vm289_vm0, %v2677_v0  ;;  %v291_v2 = vsel %vm289_vm0, %v2677_v0, 0  ;;  %v2754_v4 = vld [vmem:[%s3656_s0 + $0x8] sm:$0xff]   ;;  %v134_v5 = vshrl.u32 %v2749_v3, 16  ;;  %v136_v6 = vshll.u32 %v2749_v3, 16  ;;  %v2763_v9 = vld [vmem:[%s3656_s0 + $0x30] sm:$0xff]   ;;  %v2768_v10 = vld [vmem:[%s3656_s0 + $0x38] sm:$0xff]  }
   0x3   :  { %2412 = vmatpush3.bf16.msra.mxu0 %v291_v2  ;;  %2665 = vmatpush3.bf16.msra.mxu1 %v291_v2  ;;  %v141_v7 = vshll.u32 %v2754_v4, 16  ;;  %v145_v8 = vshrl.u32 %v2754_v4, 16  ;;  %v2773_v12 = vld [vmem:[%s3656_s0 + $0x10] sm:$0xff]   ;;  %v181_v14 = vshll.u32 %v2763_v9, 16  ;;  %v185_v15 = vshrl.u32 %v2763_v9, 16  ;;  %v2782_v19 = vld [vmem:[%s3656_s0 + $0x40] sm:$0xff]   ;;  %vm2910_vm5 = vmand %vm237_vm3, %vm132_vm1 }
   0x4   :  { %2413 = vmatprep.subr.bf16.mxu0 %v2678_v1  ;;  %2664 = vmatprep.subr.bf16.mxu1 %v2678_v1  ;;  %v138_v11 = vrot.slane %v136_v6, 1  ;;  %v189_v16 = vshll.u32 %v2768_v10, 16  ;;  %v149_v18 = vshll.u32 %v2773_v12, 16  ;;  %v193_v20 = vshrl.u32 %v2768_v10, 16  ;;  %v2788_v21 = vld [vmem:[%s3656_s0 + $0x18] sm:$0xff]   ;;  %v2814_v38 = vld [vmem:[%s3656_s0 + $0x48] sm:$0xff]  }
   0x5   :  { %v143_v13 = vrot.slane %v141_v7, 1  ;;  %v2790_v23 = vrot.slane %v181_v14, 1  ;;  %v2685_v25 = vld [vmem:[%s3655_s2 + $0x8] ss:$0 sps:$4 sm:$0xff]   ;;  %v197_v28 = vshll.u32 %v2782_v19, 16  ;;  %v153_v33 = vshrl.u32 %v2773_v12, 16 }
   0x6   :  { %v139_v17 = vor.u32 %v138_v11, %v134_v5  ;;  %v191_v24 = vrot.slane %v189_v16, 1  ;;  %v151_v27 = vrot.slane %v149_v18, 1  ;;  %v2686_v29 = vld [vmem:[%s3655_s2 + $0x20] ss:$0 sps:$4 sm:$0xff]   ;;  %v456_v32 = vsel %vm289_vm0, %v2685_v25, 0  ;;  %v2837_v47 = vld [vmem:[%s3656_s0 + $0x50] sm:$0xff]  }
   0x7   :  { %2414 = vmatpush3.bf16.msra.mxu0 %v2678_v1  ;;  %2666 = vmatpush3.bf16.msra.mxu1 %v2678_v1  ;;  %v147_v22 = vor.u32 %v145_v8, %v143_v13  ;;  %v187_v30 = vor.u32 %v185_v15, %v2790_v23  ;;  %v199_v35 = vrot.slane %v197_v28, 1  ;;  %v664_v36 = vsel %vm289_vm0, %v2686_v29, 0  ;;  %v2825_v42 = vld [vmem:[%s3656_s0 + $0x20] sm:$0xff]   ;;  %v2692_v60 = vld [vmem:[%s3655_s2 + $0x18] sm:$0xff]   ;;  %v2866_v62 = vld [vmem:[%s3656_s0 + $0x28] sm:$0xff]  }
   0x8   :  { %v144_v26 = vsel %vm132_vm1, %v139_v17, %v143_v13  ;;  %v195_v31 = vor.u32 %v193_v20, %v191_v24  ;;  %2669 = vmatprep.subr.msk.bf16.mxu1 %vm289_vm0, %v2685_v25  ;;  %2670 = vmatprep.subr.msk.bf16.mxu0 %vm289_vm0, %v2686_v29  ;;  %v157_v37 = vshll.u32 %v2788_v21, 16  ;;  %v155_v40 = vor.u32 %v153_v33, %v151_v27  ;;  %v2691_v56 = vld [vmem:[%s3655_s2] sm:$0xff]   ;;  %v2875_v1 = vld [vmem:[%s3656_s0 + $0x58] sm:$0xff]   ;;  %v2697_v13 = vld [vmem:[%s3655_s2 + $0x2c] ss:$0 sps:$4 sm:$0xff]  }
   0x9   :  { %2415 = vmatprep.mubr.msk.bf16.mxu0 %vm252_vm2, %v144_v26  ;;  %v2806_v34 = vsel %vm132_vm1, %v147_v22, %v151_v27  ;;  %v2817_v39 = vsel %vm132_vm1, %v187_v30, %v191_v24  ;;  %v201_v41 = vshrl.u32 %v2782_v19, 16  ;;  %v205_v45 = vshll.u32 %v2814_v38, 16  ;;  %v2088_v5 = vld [vmem:[%s3657_s1 + $0x60] sm:$0xf]  ;;  %v2698_v17 = vld [vmem:[%s3655_s2 + $0x38] ss:$0 sps:$4 sm:$0xff]  }
   0xa   :  { %2416 = vmatmul.mubr.msk.bf16.vlgmr.msra.gmra.mxu0 %vm252_vm2, %v2806_v34  ;;  %2427 = vmatprep.mubr.msk.bf16.mxu1 %vm252_vm2, %v2817_v39  ;;  %v2830_v43 = vsel %vm132_vm1, %v195_v31, %v199_v35  ;;  %v159_v44 = vrot.slane %v157_v37, 1  ;;  %v161_v46 = vshrl.u32 %v2788_v21, 16  ;;  %v165_v49 = vshll.u32 %v2825_v42, 16  ;;  %v2089_v26 = vld [vmem:[%s3657_s1 + $0x64] sm:$0xf] }
   0xb   :  { %2468 = vmatpush3.bf16.msra.mxu0 %v664_v36  ;;  %2428 = vmatmul.mubr.msk.bf16.vlgmr.msra.gmra.mxu1 %vm252_vm2, %v2830_v43  ;;  %v203_v48 = vor.u32 %v201_v41, %v199_v35  ;;  %v209_v50 = vshrl.u32 %v2814_v38, 16  ;;  %v207_v52 = vrot.slane %v205_v45, 1  ;;  %v213_v54 = vshll.u32 %v2837_v47, 16 }
   0xc   :  { %2440 = vmatpush3.bf16.msra.mxu1 %v456_v32  ;;  %v2844_v51 = vsel %vm132_vm1, %v155_v40, %v159_v44  ;;  %v163_v53 = vor.u32 %v161_v46, %v159_v44  ;;  %v167_v55 = vrot.slane %v165_v49, 1  ;;  %v169_v63 = vshrl.u32 %v2825_v42, 16  ;;  %2469 = vmatprep.subr.bf16.mxu0 %v2692_v60  ;;  %v2700_v49 = vld [vmem:[%s3655_s2 + $0x30] sm:$0xff]  }
   0xd   :  { %2419 = vmatprep.mubr.msk.bf16.mxu0 %vm252_vm2, %v2844_v51  ;;  %v2853_v57 = vsel %vm132_vm1, %v203_v48, %v207_v52  ;;  %v211_v58 = vor.u32 %v209_v50, %v207_v52  ;;  %v215_v59 = vrot.slane %v213_v54, 1  ;;  %2441 = vmatprep.subr.bf16.mxu1 %v2691_v56  ;;  %v217_v2 = vshrl.u32 %v2837_v47, 16  ;;  %v2699_v52 = vld [vmem:[%s3655_s2 + $0x24] sm:$0xff]  }
   0xe   :  { %2431 = vmatprep.mubr.msk.bf16.mxu1 %vm252_vm2, %v2853_v57  ;;  %v2861_v61 = vsel %vm132_vm1, %v163_v53, %v167_v55  ;;  %v171_v6 = vor.u32 %v169_v63, %v167_v55  ;;  %v173_v7 = vshll.u32 %v2866_v62, 16  ;;  %v177_v8 = vshrl.u32 %v2866_v62, 16 }
   0xf   :  { %v2870_v0 = vsel %vm132_vm1, %v211_v58, %v215_v59  ;;  %v2885_v11 = vcombine.low %v2088_v5, %v2088_v5  ;;  %v219_v14 = vor.u32 %v217_v2, %v215_v59  ;;  %v221_v15 = vshll.u32 %v2875_v1, 16  ;;  %2470 = vmatpush3.bf16.msra.mxu0 %v2692_v60  ;;  %v2701_v59 = vld [vmem:[%s3655_s2 + $0x44] ss:$0 sps:$4 sm:$0xff]  }
  0x10   :  { %2442 = vmatpush3.bf16.msra.mxu1 %v2691_v56  ;;  %v225_v16 = vshrl.u32 %v2875_v1, 16  ;;  %v175_v18 = vrot.slane %v173_v7, 1  ;;  %v588_v22 = vrot.slane %v2749_v3, 1  ;;  %v589_v24 = vrot.slane %v2754_v4, 1  ;;  %2672 = vmatprep.subr.msk.bf16.mxu0 %vm289_vm0, %v2698_v17  ;;  %v2702_v56 = vld [vmem:[%s3655_s2 + $0x50] ss:$0 sps:$4 sm:$0xff]  }
  0x11   :  { %v233_v20 = vshll.u32 %v2885_v11, 16  ;;  %2671 = vmatprep.subr.msk.bf16.mxu1 %vm289_vm0, %v2697_v13  ;;  %v223_v25 = vrot.slane %v221_v15, 1  ;;  %v2928_v37 = vcombine.low %v2088_v5, %v2089_v26  ;;  %v591_v40 = vrot.slane %v2773_v12, 1 }
  0x12   :  { %2420 = vmatmul.mubr.msk.bf16.gmra.mxu0 %vm252_vm2, %v2861_v61  ;;  %v2906_v27 = vsel %vm132_vm1, %v171_v6, %v175_v18  ;;  %v179_v28 = vor.u32 %v177_v8, %v175_v18  ;;  %v590_v35 = vsel %vm587_vm4, %v588_v22, %v589_v24  ;;  %v593_v41 = vrot.slane %v2788_v21, 1 }
  0x13   :  { %2432 = vmatmul.mubr.msk.bf16.gmra.mxu1 %vm252_vm2, %v2870_v0  ;;  %v235_v29 = vrot.slane %v233_v20, 1  ;;  %2423 = vmatprep.mubr.msk.bf16.mxu0 %vm252_vm2, %v2906_v27  ;;  %v2917_v31 = vsel %vm132_vm1, %v219_v14, %v223_v25  ;;  %v227_v32 = vor.u32 %v225_v16, %v223_v25  ;;  %v2940_v44 = vsel %vm587_vm4, %v589_v24, %v591_v40  ;;  %v2704_v25 = vld [vmem:[%s3655_s2 + $0x48] sm:$0xff]  }
  0x14   :  { %2435 = vmatprep.mubr.msk.bf16.mxu1 %vm252_vm2, %v2917_v31  ;;  %v2923_v33 = vsel %vm132_vm1, %v179_v28, %v2790_v23  ;;  %v996_v23 = vshll.u32 %v2928_v37, 16  ;;  %v1028_v46 = vsel %vm289_vm0, %v2698_v17, 0  ;;  %v2946_v48 = vsel %vm587_vm4, %v591_v40, %v593_v41  ;;  %v2706_v28 = vld [vmem:[%s3655_s2 + $0x5c] ss:$0 sps:$4 sm:$0xff]  }
  0x15   :  { %v239_v36 = vsel %vm2910_vm5, %v227_v32, %v235_v29  ;;  %v838_v50 = vsel %vm289_vm0, %v2697_v13, 0  ;;  %v595_v53 = vrot.slane %v2825_v42, 1  ;;  %v597_v54 = vrot.slane %v2866_v62, 1  ;;  %v2090_v29 = vld [vmem:[%s3657_s1 + $0x68] sm:$0xf] }
  0x16   :  { %v2942_v45 = vrot.slane %v996_v23, 1  ;;  %v609_v55 = vrot.slane %v2875_v1, 1  ;;  %v2973_v58 = vrot.slane %v2928_v37, 1  ;;  %v599_v5 = vrot.slane %v2763_v9, 1 }
  0x17   :  { %v2985_v63 = vsel %vm587_vm4, %v593_v41, %v595_v53  ;;  %v2988_v2 = vsel %vm587_vm4, %v595_v53, %v597_v54  ;;  %v601_v6 = vrot.slane %v2768_v10, 1  ;;  %v603_v13 = vrot.slane %v2782_v19, 1 }
  0x18   :  { %v2982_v60 = vsel %vm587_vm4, %v609_v55, %v2973_v58  ;;  %v3003_v7 = vsel %vm587_vm4, %v597_v54, %v599_v5  ;;  %v605_v14 = vrot.slane %v2814_v38, 1  ;;  %v607_v17 = vrot.slane %v2837_v47, 1 }
  0x19   :  { %v3006_v8 = vsel %vm587_vm4, %v599_v5, %v601_v6  ;;  %v3019_v15 = vsel %vm587_vm4, %v601_v6, %v603_v13  ;;  %v611_v22 = vrot.slane %v2885_v11, 1  ;;  %v1380_v11 = vsel %vm289_vm0, %v2702_v56, 0 }
  0x1a   :  { %2424 = vmatmul.mubr.msk.bf16.gmra.mxu0 %vm252_vm2, %v2923_v33  ;;  %v3022_v16 = vsel %vm587_vm4, %v603_v13, %v605_v14  ;;  %v3034_v18 = vsel %vm587_vm4, %v605_v14, %v607_v17  ;;  %v3037_v20 = vsel %vm587_vm4, %v607_v17, %v609_v55  ;;  %v1206_v26 = vsel %vm289_vm0, %v2701_v59, 0 }
  0x1b   :  { %2471 = vmatprep.mubr.msk.bf16.mxu0 %vm252_vm2, %v590_v35  ;;  %2436 = vmatmul.mubr.msk.bf16.gmra.mxu1 %vm252_vm2, %v239_v36  ;;  %v615_v24 = vsel %vm587_vm4, %v609_v55, %v611_v22  ;;  %v2163_v30 = vcombine.low %v2090_v29, %v2090_v29 }
  0x1c   :  { %2443 = vmatprep.mubr.msk.bf16.mxu1 %vm252_vm2, %v2749_v3  ;;  %v2954_v3 = vsel %vm2910_vm5, %v227_v32, %v2942_v45  ;;  %v999_v32 = vshrl.u32 %v2928_v37, 16 }
  0x1d   :  { %v1003_v35 = vshll.u32 %v2163_v30, 16 }
  0x1e   :  { %v3113_v36 = vor.u32 %v999_v32, %v2942_v45  ;;  %v2709_v45 = vld [vmem:[%s3655_s2 + $0x60] sm:$0xff]  }
  0x1f   :  { %v1005_v40 = vrot.slane %v1003_v35, 1 }
  0x21   :  { %v1006_v41 = vsel %vm132_vm1, %v3113_v36, %v1005_v40 }
  0x22   :  { %2472 = vmatmul.mubr.msk.bf16.vlgmr.msra.gmra.mxu0 %vm252_vm2, %v2940_v44 }
  0x23   :  { %2524 = vmatpush3.bf16.msra.mxu0 %v1028_v46  ;;  %2475 = vmatprep.mubr.msk.bf16.mxu0 %vm252_vm2, %v2946_v48  ;;  %v1569_v46 = vsel %vm289_vm0, %v2706_v28, 0 }
  0x24   :  { %2444 = vmatmul.mubr.msk.bf16.vlgmr.msra.gmra.mxu1 %vm252_vm2, %v2754_v4  ;;  %2525 = vmatprep.subr.bf16.mxu0 %v2700_v49 }
  0x25   :  { %2496 = vmatpush3.bf16.msra.mxu1 %v838_v50  ;;  %2447 = vmatprep.mubr.msk.bf16.mxu1 %vm252_vm2, %v2773_v12 }
  0x26   :  { %2497 = vmatprep.subr.bf16.mxu1 %v2699_v52 }
  0x27   :  { %2526 = vmatpush3.bf16.msra.mxu0 %v2700_v49 }
  0x28   :  { %2674 = vmatprep.subr.msk.bf16.mxu0 %vm289_vm0, %v2702_v56 }
  0x29   :  { %2498 = vmatpush3.bf16.msra.mxu1 %v2699_v52 }
  0x2a   :  { %2476 = vmatmul.mubr.msk.bf16.gmra.mxu0 %vm252_vm2, %v2985_v63  ;;  %2673 = vmatprep.subr.msk.bf16.mxu1 %vm289_vm0, %v2701_v59 }
  0x2b   :  { %2479 = vmatprep.mubr.msk.bf16.mxu0 %vm252_vm2, %v2988_v2 }
  0x2c   :  { %2448 = vmatmul.mubr.msk.bf16.gmra.mxu1 %vm252_vm2, %v2788_v21 }
  0x2d   :  { %2451 = vmatprep.mubr.msk.bf16.mxu1 %vm252_vm2, %v2825_v42 }
  0x32   :  { %2480 = vmatmul.mubr.msk.bf16.gmra.mxu0 %vm252_vm2, %v3003_v7 }
  0x33   :  { %2483 = vmatprep.mubr.msk.bf16.mxu0 %vm252_vm2, %v3006_v8 }
  0x34   :  { %2452 = vmatmul.mubr.msk.bf16.gmra.mxu1 %vm252_vm2, %v2866_v62 }
  0x35   :  { %2455 = vmatprep.mubr.msk.bf16.mxu1 %vm252_vm2, %v2763_v9 }
  0x3a   :  { %2484 = vmatmul.mubr.msk.bf16.gmra.mxu0 %vm252_vm2, %v3019_v15 }
  0x3b   :  { %2487 = vmatprep.mubr.msk.bf16.mxu0 %vm252_vm2, %v3022_v16 }
  0x3c   :  { %2456 = vmatmul.mubr.msk.bf16.gmra.mxu1 %vm252_vm2, %v2768_v10 }
  0x3d   :  { %2459 = vmatprep.mubr.msk.bf16.mxu1 %vm252_vm2, %v2782_v19 }
  0x42   :  { %2488 = vmatmul.mubr.msk.bf16.gmra.mxu0 %vm252_vm2, %v3034_v18 }
  0x43   :  { %2491 = vmatprep.mubr.msk.bf16.mxu0 %vm252_vm2, %v3037_v20 }
  0x44   :  { %2460 = vmatmul.mubr.msk.bf16.gmra.mxu1 %vm252_vm2, %v2814_v38 }
  0x45   :  { %2463 = vmatprep.mubr.msk.bf16.mxu1 %vm252_vm2, %v2837_v47 }
  0x4a   :  { %2492 = vmatmul.mubr.msk.bf16.gmra.mxu0 %vm252_vm2, %v615_v24 }
  0x4b   :  { %2527 = vmatprep.mubr.msk.bf16.mxu0 %vm252_vm2, %v2806_v34  ;;  %v2703_v34 = vld [vmem:[%s3655_s2 + $0x3c] sm:$0xff]  }
  0x4c   :  { %2464 = vmatmul.mubr.msk.bf16.gmra.mxu1 %vm252_vm2, %v2875_v1 }
  0x4d   :  { %2499 = vmatprep.mubr.msk.bf16.mxu1 %vm252_vm2, %v2754_v4  ;;  %v2707_v4 = vld [vmem:[%s3655_s2 + $0x68] ss:$0 sps:$4 sm:$0xff]  }
  0x4e   :  { %v1747_v23 = vsel %vm289_vm0, %v2707_v4, 0 }
  0x52   :  { %2528 = vmatmul.mubr.msk.bf16.vlgmr.msra.gmra.mxu0 %vm252_vm2, %v2844_v51 }
  0x53   :  { %2580 = vmatpush3.bf16.msra.mxu0 %v1380_v11  ;;  %2531 = vmatprep.mubr.msk.bf16.mxu0 %vm252_vm2, %v2861_v61 }
  0x54   :  { %2500 = vmatmul.mubr.msk.bf16.vlgmr.msra.gmra.mxu1 %vm252_vm2, %v2773_v12  ;;  %2581 = vmatprep.subr.bf16.mxu0 %v2704_v25 }
  0x55   :  { %2552 = vmatpush3.bf16.msra.mxu1 %v1206_v26  ;;  %2503 = vmatprep.mubr.msk.bf16.mxu1 %vm252_vm2, %v2788_v21 }
  0x56   :  { %2553 = vmatprep.subr.bf16.mxu1 %v2703_v34 }
  0x57   :  { %2582 = vmatpush3.bf16.msra.mxu0 %v2704_v25 }
  0x58   :  { %2676 = vmatprep.subr.msk.bf16.mxu0 %vm289_vm0, %v2707_v4 }
  0x59   :  { %2554 = vmatpush3.bf16.msra.mxu1 %v2703_v34 }
  0x5a   :  { %2532 = vmatmul.mubr.msk.bf16.gmra.mxu0 %vm252_vm2, %v2906_v27  ;;  %2675 = vmatprep.subr.msk.bf16.mxu1 %vm289_vm0, %v2706_v28 }
  0x5b   :  { %2535 = vmatprep.mubr.msk.bf16.mxu0 %vm252_vm2, %v2923_v33 }
  0x5c   :  { %2504 = vmatmul.mubr.msk.bf16.gmra.mxu1 %vm252_vm2, %v2825_v42 }
  0x5d   :  { %2507 = vmatprep.mubr.msk.bf16.mxu1 %vm252_vm2, %v2866_v62 }
  0x62   :  { %2536 = vmatmul.mubr.msk.bf16.gmra.mxu0 %vm252_vm2, %v2817_v39 }
  0x63   :  { %2539 = vmatprep.mubr.msk.bf16.mxu0 %vm252_vm2, %v2830_v43 }
  0x64   :  { %2508 = vmatmul.mubr.msk.bf16.gmra.mxu1 %vm252_vm2, %v2763_v9 }
  0x65   :  { %2511 = vmatprep.mubr.msk.bf16.mxu1 %vm252_vm2, %v2768_v10 }
  0x6a   :  { %2540 = vmatmul.mubr.msk.bf16.gmra.mxu0 %vm252_vm2, %v2853_v57 }
  0x6b   :  { %2543 = vmatprep.mubr.msk.bf16.mxu0 %vm252_vm2, %v2870_v0 }
  0x6c   :  { %2512 = vmatmul.mubr.msk.bf16.gmra.mxu1 %vm252_vm2, %v2782_v19 }
  0x6d   :  { %2515 = vmatprep.mubr.msk.bf16.mxu1 %vm252_vm2, %v2814_v38 }
  0x72   :  { %2544 = vmatmul.mubr.msk.bf16.gmra.mxu0 %vm252_vm2, %v2917_v31 }
  0x73   :  { %2547 = vmatprep.mubr.msk.bf16.mxu0 %vm252_vm2, %v2954_v3 }
  0x74   :  { %2516 = vmatmul.mubr.msk.bf16.gmra.mxu1 %vm252_vm2, %v2837_v47 }
  0x75   :  { %2519 = vmatprep.mubr.msk.bf16.mxu1 %vm252_vm2, %v2875_v1 }
  0x7a   :  { %2548 = vmatmul.mubr.msk.bf16.gmra.mxu0 %vm252_vm2, %v1006_v41 }
  0x7b   :  { %2583 = vmatprep.mubr.msk.bf16.mxu0 %vm252_vm2, %v2773_v12  ;;  %v2708_v12 = vld [vmem:[%s3655_s2 + $0x54] sm:$0xff]  }
  0x7c   :  { %2520 = vmatmul.mubr.msk.bf16.gmra.mxu1 %vm252_vm2, %v2928_v37 }
  0x7d   :  { %2555 = vmatprep.mubr.msk.bf16.mxu1 %vm252_vm2, %v2940_v44 }
  0x82   :  { %2584 = vmatmul.mubr.msk.bf16.vlgmr.msra.gmra.mxu0 %vm252_vm2, %v2788_v21 }
  0x83   :  { %2636 = vmatpush3.bf16.msra.mxu0 %v1747_v23  ;;  %2587 = vmatprep.mubr.msk.bf16.mxu0 %vm252_vm2, %v2825_v42 }
  0x84   :  { %2556 = vmatmul.mubr.msk.bf16.vlgmr.msra.gmra.mxu1 %vm252_vm2, %v2946_v48  ;;  %2637 = vmatprep.subr.bf16.mxu0 %v2709_v45 }
  0x85   :  { %2608 = vmatpush3.bf16.msra.mxu1 %v1569_v46  ;;  %2559 = vmatprep.mubr.msk.bf16.mxu1 %vm252_vm2, %v2985_v63 }
  0x86   :  { %2609 = vmatprep.subr.bf16.mxu1 %v2708_v12 }
  0x87   :  { %2638 = vmatpush3.bf16.msra.mxu0 %v2709_v45 }
  0x89   :  { %2610 = vmatpush3.bf16.msra.mxu1 %v2708_v12 }
  0x8a   :  { %2588 = vmatmul.mubr.msk.bf16.gmra.mxu0 %vm252_vm2, %v2866_v62 }
  0x8b   :  { %2591 = vmatprep.mubr.msk.bf16.mxu0 %vm252_vm2, %v2763_v9  ;;  %v2091_v9 = vld [vmem:[%s3657_s1 + $0x6c] sm:$0xf] }
  0x8c   :  { %2560 = vmatmul.mubr.msk.bf16.gmra.mxu1 %vm252_vm2, %v2988_v2 }
  0x8d   :  { %2563 = vmatprep.mubr.msk.bf16.mxu1 %vm252_vm2, %v3003_v7 }
  0x92   :  { %2592 = vmatmul.mubr.msk.bf16.gmra.mxu0 %vm252_vm2, %v2768_v10  ;;  %v1184_v10 = vrot.slane %v2163_v30, 1 }
  0x93   :  { %2595 = vmatprep.mubr.msk.bf16.mxu0 %vm252_vm2, %v2782_v19  ;;  %v2192_v19 = vcombine.low %v2090_v29, %v2091_v9 }
  0x94   :  { %2564 = vmatmul.mubr.msk.bf16.gmra.mxu1 %vm252_vm2, %v3006_v8  ;;  %v1185_v21 = vsel %vm587_vm4, %v2973_v58, %v1184_v10 }
  0x95   :  { %2567 = vmatprep.mubr.msk.bf16.mxu1 %vm252_vm2, %v3019_v15  ;;  %v1538_v42 = vshll.u32 %v2192_v19, 16 }
  0x97   :  { %v1540_v62 = vrot.slane %v1538_v42, 1 }
  0x9a   :  { %2596 = vmatmul.mubr.msk.bf16.gmra.mxu0 %vm252_vm2, %v2814_v38 }
  0x9b   :  { %2599 = vmatprep.mubr.msk.bf16.mxu0 %vm252_vm2, %v2837_v47 }
  0x9c   :  { %2568 = vmatmul.mubr.msk.bf16.gmra.mxu1 %vm252_vm2, %v3022_v16 }
  0x9d   :  { %2571 = vmatprep.mubr.msk.bf16.mxu1 %vm252_vm2, %v3034_v18 }
  0xa2   :  { %2600 = vmatmul.mubr.msk.bf16.gmra.mxu0 %vm252_vm2, %v2875_v1 }
  0xa3   :  { %2603 = vmatprep.mubr.msk.bf16.mxu0 %vm252_vm2, %v2928_v37 }
  0xa4   :  { %2572 = vmatmul.mubr.msk.bf16.gmra.mxu1 %vm252_vm2, %v3037_v20 }
  0xa5   :  { %2575 = vmatprep.mubr.msk.bf16.mxu1 %vm252_vm2, %v2982_v60 }
  0xaa   :  { %2604 = vmatmul.mubr.msk.bf16.gmra.mxu0 %vm252_vm2, %v2192_v19 }
  0xab   :  { %2639 = vmatprep.mubr.msk.bf16.mxu0 %vm252_vm2, %v2946_v48 }
  0xac   :  { %2576 = vmatmul.mubr.msk.bf16.gmra.mxu1 %vm252_vm2, %v1185_v21 }
  0xad   :  { %2611 = vmatprep.mubr.msk.bf16.mxu1 %vm252_vm2, %v2844_v51  ;;  %v1724_v51 = vrot.slane %v2192_v19, 1 }
  0xb2   :  { %2640 = vmatmul.mubr.msk.bf16.vlgmr.msra.gmra.mxu0 %vm252_vm2, %v2985_v63 }
  0xb3   :  { %2643 = vmatprep.mubr.msk.bf16.mxu0 %vm252_vm2, %v2988_v2 }
  0xb4   :  { %2612 = vmatmul.mubr.msk.bf16.vlgmr.msra.gmra.mxu1 %vm252_vm2, %v2861_v61 }
  0xb5   :  { %2615 = vmatprep.mubr.msk.bf16.mxu1 %vm252_vm2, %v2906_v27 }
  0xba   :  { %2644 = vmatmul.mubr.msk.bf16.gmra.mxu0 %vm252_vm2, %v3003_v7 }
  0xbb   :  { %2647 = vmatprep.mubr.msk.bf16.mxu0 %vm252_vm2, %v3006_v8 }
  0xbc   :  { %2616 = vmatmul.mubr.msk.bf16.gmra.mxu1 %vm252_vm2, %v2923_v33  ;;  %v1725_v33 = vsel %vm587_vm4, %v2973_v58, %v1724_v51 }
  0xbd   :  { %2619 = vmatprep.mubr.msk.bf16.mxu1 %vm252_vm2, %v2817_v39 }
  0xc2   :  { %2648 = vmatmul.mubr.msk.bf16.gmra.mxu0 %vm252_vm2, %v3019_v15 }
  0xc3   :  { %2651 = vmatprep.mubr.msk.bf16.mxu0 %vm252_vm2, %v3022_v16 }
  0xc4   :  { %2620 = vmatmul.mubr.msk.bf16.gmra.mxu1 %vm252_vm2, %v2830_v43  ;;  %v2711_v43 = vld [vmem:[%s3657_s1 + $0x70] ss:$0 sps:$4 sm:$0xff]  }
  0xc5   :  { %2623 = vmatprep.mubr.msk.bf16.mxu1 %vm252_vm2, %v2853_v57  ;;  %v1546_v37 = vshll.u32 %v2711_v43, 16  ;;  %v1726_v49 = vrot.slane %v2711_v43, 1 }
  0xc7   :  { %v1548_v54 = vrot.slane %v1546_v37, 1  ;;  %v1727_v58 = vsel %vm587_vm4, %v1724_v51, %v1726_v49 }
  0xca   :  { %v2417_v38 = vpop.f32.mrf.mxu0  ;;  %2652 = vmatmul.mubr.msk.bf16.gmra.mxu0 %vm252_vm2, %v3034_v18 }
  0xcb   :  { %2655 = vmatprep.mubr.msk.bf16.mxu0 %vm252_vm2, %v3037_v20  ;;  %v3215_v39 = vpop.f32.mrf.mxu1 }
  0xcc   :  { %2624 = vmatmul.mubr.msk.bf16.gmra.mxu1 %vm252_vm2, %v2870_v0  ;;  %v327_v47 = vpop.f32.mrf.mxu0  ;;  %v1542_v0 = vshrl.u32 %v2192_v19, 16 }
  0xcd   :  { %2627 = vmatprep.mubr.msk.bf16.mxu1 %vm252_vm2, %v2917_v31  ;;  %v3224_v57 = vpop.f32.mrf.mxu1  ;;  %v1541_v31 = vsel %vm132_vm1, %v3113_v36, %v1540_v62 }
  0xce   :  { %v2418_v61 = vpop.f32.mrf.mxu0  ;;  %v1544_v53 = vor.u32 %v1542_v0, %v1540_v62 }
  0xcf   :  { %v3226_v1 = vpop.f32.mrf.mxu1 }
  0xd0   :  { %v330_v27 = vpop.f32.mrf.mxu0  ;;  %v1549_v63 = vsel %vm132_vm1, %v1544_v53, %v1548_v54 }
  0xd1   :  { %v3230_v44 = vpop.f32.mrf.mxu1 }
  0xd2   :  { %v2421_v48 = vpop.f32.mrf.mxu0  ;;  %2656 = vmatmul.mubr.msk.bf16.gmra.mxu0 %vm252_vm2, %v2982_v60 }
  0xd3   :  { %2659 = vmatprep.mubr.msk.bf16.mxu0 %vm252_vm2, %v1725_v33  ;;  %v3237_v50 = vpop.f32.mrf.mxu1 }
  0xd4   :  { %2628 = vmatmul.mubr.msk.bf16.gmra.mxu1 %vm252_vm2, %v2954_v3  ;;  %v343_v52 = vpop.f32.mrf.mxu0 }
  0xd5   :  { %2631 = vmatprep.mubr.msk.bf16.mxu1 %vm252_vm2, %v1541_v31  ;;  %v3242_v55 = vpop.f32.mrf.mxu1 }
  0xd6   :  { %v2422_v56 = vpop.f32.mrf.mxu0 }
  0xd7   :  { %v3245_v59 = vpop.f32.mrf.mxu1 }
  0xd8   :  { %v346_v60 = vpop.f32.mrf.mxu0 }
  0xd9   :  { %v3248_v2 = vpop.f32.mrf.mxu1 }
  0xda   :  { %v2425_v5 = vpop.f32.mrf.mxu0  ;;  %2660 = vmatmul.mubr.msk.bf16.gmra.mxu0 %vm252_vm2, %v1727_v58 }
  0xdb   :  { %v3251_v3 = vpop.f32.mrf.mxu1 }
  0xdc   :  { %2632 = vmatmul.mubr.msk.bf16.gmra.mxu1 %vm252_vm2, %v1549_v63  ;;  %v359_v6 = vpop.f32.mrf.mxu0 }
  0xdd   :  { %v3254_v7 = vpop.f32.mrf.mxu1 }
  0xde   :  { %v2426_v8 = vpop.f32.mrf.mxu0 }
  0xdf   :  { %v3256_v13 = vpop.f32.mrf.mxu1 }
  0xe0   :  { %v362_v14 = vpop.f32.mrf.mxu0 }
  0xe1   :  { %v3258_v15 = vpop.f32.mrf.mxu1 }
  0xe2   :  { %v2473_v16 = vpop.f32.mrf.mxu0 }
  0xe4   :  { %v2445_v17 = vpop.f32.mrf.mxu1  ;;  %v700_v18 = vpop.f32.mrf.mxu0 }
  0xe5   :  { %v501_v20 = vadd.f32 %v2445_v17, %v2417_v38 }
  0xe6   :  { %v492_v22 = vpop.f32.mrf.mxu1  ;;  %v2474_v24 = vpop.f32.mrf.mxu0 }
  0xe7   :  { %v3260_v11 = vadd.f32 %v2473_v16, %v501_v20  ;;  %v493_v25 = vadd.f32 %v492_v22, %v327_v47 }
  0xe8   :  { %v2446_v26 = vpop.f32.mrf.mxu1  ;;  %v703_v34 = vpop.f32.mrf.mxu0 }
  0xe9   :  { %v3262_v4 = vadd.f32 %v700_v18, %v493_v25  ;;  %v504_v28 = vadd.f32 %v2446_v26, %v2418_v61 }
  0xea   :  { %v495_v29 = vpop.f32.mrf.mxu1  ;;  %v2477_v30 = vpop.f32.mrf.mxu0 }
  0xeb   :  { %v3264_v32 = vadd.f32 %v2474_v24, %v504_v28  ;;  %v496_v35 = vadd.f32 %v495_v29, %v330_v27 }
  0xec   :  { %v2449_v36 = vpop.f32.mrf.mxu1  ;;  %v716_v40 = vpop.f32.mrf.mxu0 }
  0xed   :  { %v3266_v41 = vadd.f32 %v703_v34, %v496_v35  ;;  %v517_v23 = vadd.f32 %v2449_v36, %v2421_v48 }
  0xee   :  { %v508_v45 = vpop.f32.mrf.mxu1  ;;  %v2478_v46 = vpop.f32.mrf.mxu0 }
  0xef   :  { %v3268_v12 = vadd.f32 %v2477_v30, %v517_v23  ;;  %v509_v9 = vadd.f32 %v508_v45, %v343_v52 }
  0xf0   :  { %v2450_v10 = vpop.f32.mrf.mxu1  ;;  %v719_v19 = vpop.f32.mrf.mxu0 }
  0xf1   :  { %v3270_v21 = vadd.f32 %v716_v40, %v509_v9  ;;  %v520_v38 = vadd.f32 %v2450_v10, %v2422_v56 }
  0xf2   :  { %v511_v42 = vpop.f32.mrf.mxu1  ;;  %v2481_v47 = vpop.f32.mrf.mxu0 }
  0xf3   :  { %v3272_v51 = vadd.f32 %v2478_v46, %v520_v38  ;;  %v512_v43 = vadd.f32 %v511_v42, %v346_v60 }
  0xf4   :  { %v2453_v61 = vpop.f32.mrf.mxu1  ;;  %v732_v62 = vpop.f32.mrf.mxu0 }
  0xf5   :  { %v3274_v27 = vadd.f32 %v719_v19, %v512_v43  ;;  %v533_v33 = vadd.f32 %v2453_v61, %v2425_v5 }
  0xf6   :  { %v524_v0 = vpop.f32.mrf.mxu1  ;;  %v2482_v37 = vpop.f32.mrf.mxu0 }
  0xf7   :  { %v3276_v48 = vadd.f32 %v2481_v47, %v533_v33  ;;  %v525_v31 = vadd.f32 %v524_v0, %v359_v6 }
  0xf8   :  { %v2454_v49 = vpop.f32.mrf.mxu1  ;;  %v735_v52 = vpop.f32.mrf.mxu0 }
  0xf9   :  { %v3278_v53 = vadd.f32 %v732_v62, %v525_v31  ;;  %v536_v54 = vadd.f32 %v2454_v49, %v2426_v8 }
  0xfa   :  { %v527_v56 = vpop.f32.mrf.mxu1  ;;  %v2485_v58 = vpop.f32.mrf.mxu0 }
  0xfb   :  { %v3280_v63 = vadd.f32 %v2482_v37, %v536_v54  ;;  %v528_v60 = vadd.f32 %v527_v56, %v362_v14 }
  0xfc   :  { %v2457_v16 = vpop.f32.mrf.mxu1  ;;  %v748_v17 = vpop.f32.mrf.mxu0 }
  0xfd   :  { %v3282_v18 = vadd.f32 %v735_v52, %v528_v60  ;;  %v549_v5 = vadd.f32 %v2457_v16, %v3215_v39 }
  0xfe   :  { %v540_v20 = vpop.f32.mrf.mxu1  ;;  %v2486_v22 = vpop.f32.mrf.mxu0 }
  0xff   :  { %v3285_v24 = vadd.f32 %v2485_v58, %v549_v5  ;;  %v541_v6 = vadd.f32 %v540_v20, %v3224_v57 }
 0x100   :  { %v2458_v25 = vpop.f32.mrf.mxu1  ;;  %v751_v26 = vpop.f32.mrf.mxu0 }
 0x101   :  { %v3288_v8 = vadd.f32 %v748_v17, %v541_v6  ;;  %v552_v34 = vadd.f32 %v2458_v25, %v3226_v1 }
 0x102   :  { %v543_v28 = vpop.f32.mrf.mxu1  ;;  %v2489_v14 = vpop.f32.mrf.mxu0 }
 0x103   :  { %v3291_v29 = vadd.f32 %v2486_v22, %v552_v34  ;;  %v544_v30 = vadd.f32 %v543_v28, %v3230_v44 }
 0x104   :  { %v2461_v35 = vpop.f32.mrf.mxu1  ;;  %v764_v39 = vpop.f32.mrf.mxu0 }
 0x105   :  { %v3294_v36 = vadd.f32 %v751_v26, %v544_v30  ;;  %v565_v40 = vadd.f32 %v2461_v35, %v3237_v50 }
 0x106   :  { %v556_v23 = vpop.f32.mrf.mxu1  ;;  %v2490_v57 = vpop.f32.mrf.mxu0 }
 0x107   :  { %v3297_v45 = vadd.f32 %v2489_v14, %v565_v40  ;;  %v557_v46 = vadd.f32 %v556_v23, %v3242_v55 }
 0x108   :  { %v2462_v9 = vpop.f32.mrf.mxu1  ;;  %v767_v1 = vpop.f32.mrf.mxu0 }
 0x109   :  { %v3300_v10 = vadd.f32 %v764_v39, %v557_v46  ;;  %v568_v19 = vadd.f32 %v2462_v9, %v3245_v59 }
 0x10a   :  { %v559_v38 = vpop.f32.mrf.mxu1  ;;  %v2493_v44 = vpop.f32.mrf.mxu0 }
 0x10b   :  { %v3303_v42 = vadd.f32 %v2490_v57, %v568_v19  ;;  %v560_v47 = vadd.f32 %v559_v38, %v3248_v2 }
 0x10c   :  { %v2465_v43 = vpop.f32.mrf.mxu1  ;;  %v780_v50 = vpop.f32.mrf.mxu0 }
 0x10d   :  { %v3306_v61 = vadd.f32 %v767_v1, %v560_v47  ;;  %v581_v62 = vadd.f32 %v2465_v43, %v3251_v3 }
 0x10e   :  { %v572_v33 = vpop.f32.mrf.mxu1  ;;  %v2494_v55 = vpop.f32.mrf.mxu0 }
 0x10f   :  { %v3309_v0 = vadd.f32 %v2493_v44, %v581_v62  ;;  %v573_v37 = vadd.f32 %v572_v33, %v3254_v7 }
 0x110   :  { %v2466_v31 = vpop.f32.mrf.mxu1  ;;  %v783_v59 = vpop.f32.mrf.mxu0 }
 0x111   :  { %v3312_v49 = vadd.f32 %v780_v50, %v573_v37  ;;  %v584_v52 = vadd.f32 %v2466_v31, %v3256_v13 }
 0x112   :  { %v575_v54 = vpop.f32.mrf.mxu1  ;;  %v2529_v2 = vpop.f32.mrf.mxu0 }
 0x113   :  { %v3315_v56 = vadd.f32 %v2494_v55, %v584_v52  ;;  %v576_v58 = vadd.f32 %v575_v54, %v3258_v15 }
 0x114   :  { %v2501_v60 = vpop.f32.mrf.mxu1  ;;  %v1064_v3 = vpop.f32.mrf.mxu0 }
 0x115   :  { %v3318_v16 = vadd.f32 %v783_v59, %v576_v58  ;;  %v971_v17 = vadd.f32 %v2501_v60, %v3260_v11 }
 0x116   :  { %v874_v5 = vpop.f32.mrf.mxu1  ;;  %v2530_v7 = vpop.f32.mrf.mxu0 }
 0x117   :  { %v3321_v20 = vadd.f32 %v2529_v2, %v971_v17  ;;  %v969_v22 = vadd.f32 %v874_v5, %v3262_v4 }
 0x118   :  { %v2502_v6 = vpop.f32.mrf.mxu1  ;;  %v1067_v13 = vpop.f32.mrf.mxu0 }
 0x119   :  { %v3324_v25 = vadd.f32 %v1064_v3, %v969_v22  ;;  %v972_v26 = vadd.f32 %v2502_v6, %v3264_v32 }
 0x11a   :  { %v877_v34 = vpop.f32.mrf.mxu1  ;;  %v2533_v15 = vpop.f32.mrf.mxu0 }
 0x11b   :  { %v3327_v28 = vadd.f32 %v2530_v7, %v972_v26  ;;  %v970_v14 = vadd.f32 %v877_v34, %v3266_v41 }
 0x11c   :  { %v2505_v30 = vpop.f32.mrf.mxu1  ;;  %v1080_v11 = vpop.f32.mrf.mxu0 }
 0x11d   :  { %v3330_v35 = vadd.f32 %v1067_v13, %v970_v14  ;;  %v975_v39 = vadd.f32 %v2505_v30, %v3268_v12 }
 0x11e   :  { %v890_v40 = vpop.f32.mrf.mxu1  ;;  %v2534_v4 = vpop.f32.mrf.mxu0 }
 0x11f   :  { %v3333_v23 = vadd.f32 %v2533_v15, %v975_v39  ;;  %v973_v57 = vadd.f32 %v890_v40, %v3270_v21 }
 0x120   :  { %v2506_v46 = vpop.f32.mrf.mxu1  ;;  %v1083_v32 = vpop.f32.mrf.mxu0 }
 0x121   :  { %v3336_v9 = vadd.f32 %v1080_v11, %v973_v57  ;;  %v976_v1 = vadd.f32 %v2506_v46, %v3272_v51 }
 0x122   :  { %v893_v19 = vpop.f32.mrf.mxu1  ;;  %v2537_v41 = vpop.f32.mrf.mxu0 }
 0x123   :  { %v3339_v38 = vadd.f32 %v2534_v4, %v976_v1  ;;  %v974_v44 = vadd.f32 %v893_v19, %v3274_v27 }
 0x124   :  { %v2509_v47 = vpop.f32.mrf.mxu1  ;;  %v1096_v12 = vpop.f32.mrf.mxu0 }
 0x125   :  { %v3342_v43 = vadd.f32 %v1083_v32, %v974_v44  ;;  %v979_v50 = vadd.f32 %v2509_v47, %v3276_v48 }
 0x126   :  { %v906_v62 = vpop.f32.mrf.mxu1  ;;  %v2538_v21 = vpop.f32.mrf.mxu0 }
 0x127   :  { %v3345_v33 = vadd.f32 %v2537_v41, %v979_v50  ;;  %v977_v55 = vadd.f32 %v906_v62, %v3278_v53 }
 0x128   :  { %v2510_v37 = vpop.f32.mrf.mxu1  ;;  %v1099_v51 = vpop.f32.mrf.mxu0 }
 0x129   :  { %v3348_v31 = vadd.f32 %v1096_v12, %v977_v55  ;;  %v980_v59 = vadd.f32 %v2510_v37, %v3280_v63 }
 0x12a   :  { %v909_v52 = vpop.f32.mrf.mxu1  ;;  %v2541_v27 = vpop.f32.mrf.mxu0 }
 0x12b   :  { %v3351_v54 = vadd.f32 %v2538_v21, %v980_v59  ;;  %v978_v2 = vadd.f32 %v909_v52, %v3282_v18 }
 0x12c   :  { %v2513_v58 = vpop.f32.mrf.mxu1  ;;  %v1112_v48 = vpop.f32.mrf.mxu0 }
 0x12d   :  { %v3354_v60 = vadd.f32 %v1099_v51, %v978_v2  ;;  %v983_v3 = vadd.f32 %v2513_v58, %v3285_v24 }
 0x12e   :  { %v922_v17 = vpop.f32.mrf.mxu1  ;;  %v2542_v53 = vpop.f32.mrf.mxu0 }
 0x12f   :  { %v3357_v5 = vadd.f32 %v2541_v27, %v983_v3  ;;  %v981_v7 = vadd.f32 %v922_v17, %v3288_v8 }
 0x130   :  { %v2514_v22 = vpop.f32.mrf.mxu1  ;;  %v1115_v63 = vpop.f32.mrf.mxu0 }
 0x131   :  { %v3360_v6 = vadd.f32 %v1112_v48, %v981_v7  ;;  %v984_v13 = vadd.f32 %v2514_v22, %v3291_v29 }
 0x132   :  { %v925_v26 = vpop.f32.mrf.mxu1  ;;  %v2545_v18 = vpop.f32.mrf.mxu0 }
 0x133   :  { %v3363_v34 = vadd.f32 %v2542_v53, %v984_v13  ;;  %v982_v15 = vadd.f32 %v925_v26, %v3294_v36 }
 0x134   :  { %v2517_v14 = vpop.f32.mrf.mxu1  ;;  %v1128_v24 = vpop.f32.mrf.mxu0 }
 0x135   :  { %v3366_v30 = vadd.f32 %v1115_v63, %v982_v15  ;;  %v987_v11 = vadd.f32 %v2517_v14, %v3297_v45 }
 0x136   :  { %v938_v39 = vpop.f32.mrf.mxu1  ;;  %v2546_v8 = vpop.f32.mrf.mxu0 }
 0x137   :  { %v3369_v40 = vadd.f32 %v2545_v18, %v987_v11  ;;  %v985_v4 = vadd.f32 %v938_v39, %v3300_v10 }
 0x138   :  { %v2518_v57 = vpop.f32.mrf.mxu1  ;;  %v1131_v29 = vpop.f32.mrf.mxu0 }
 0x139   :  { %v3372_v46 = vadd.f32 %v1128_v24, %v985_v4  ;;  %v988_v32 = vadd.f32 %v2518_v57, %v3303_v42 }
 0x13a   :  { %v941_v1 = vpop.f32.mrf.mxu1  ;;  %v2549_v36 = vpop.f32.mrf.mxu0 }
 0x13b   :  { %3662 = vst [vmem:[#allocation2_spill] sm:$0xff] %v3372_v46  ;;  %v3375_v19 = vadd.f32 %v2546_v8, %v988_v32  ;;  %v986_v41 = vadd.f32 %v941_v1, %v3306_v61 }
 0x13c   :  { %v2521_v44 = vpop.f32.mrf.mxu1  ;;  %v1144_v45 = vpop.f32.mrf.mxu0 }
 0x13d   :  { %3663 = vst [vmem:[#allocation3_spill] sm:$0xff] %v3375_v19  ;;  %v3378_v47 = vadd.f32 %v1131_v29, %v986_v41  ;;  %v991_v12 = vadd.f32 %v2521_v44, %v3309_v0 }
 0x13e   :  { %v954_v50 = vpop.f32.mrf.mxu1  ;;  %v2550_v10 = vpop.f32.mrf.mxu0 }
 0x13f   :  { %3664 = vst [vmem:[#allocation4_spill] sm:$0xff] %v3378_v47  ;;  %v3381_v62 = vadd.f32 %v2549_v36, %v991_v12  ;;  %v989_v21 = vadd.f32 %v954_v50, %v3312_v49 }
 0x140   :  { %v2522_v55 = vpop.f32.mrf.mxu1  ;;  %v1147_v42 = vpop.f32.mrf.mxu0 }
 0x141   :  { %3665 = vst [vmem:[#allocation5_spill] sm:$0xff] %v3381_v62  ;;  %v3384_v37 = vadd.f32 %v1144_v45, %v989_v21  ;;  %v992_v51 = vadd.f32 %v2522_v55, %v3315_v56 }
 0x142   :  { %v957_v59 = vpop.f32.mrf.mxu1  ;;  %v2585_v61 = vpop.f32.mrf.mxu0 }
 0x143   :  { %3666 = vst [vmem:[#allocation6_spill] sm:$0xff] %v3384_v37  ;;  %v3387_v52 = vadd.f32 %v2550_v10, %v992_v51  ;;  %v990_v27 = vadd.f32 %v957_v59, %v3318_v16 }
 0x144   :  { %v2557_v2 = vpop.f32.mrf.mxu1  ;;  %v1416_v0 = vpop.f32.mrf.mxu0 }
 0x145   :  { %3667 = vst [vmem:[#allocation7_spill] sm:$0xff] %v3387_v52  ;;  %v3390_v58 = vadd.f32 %v1147_v42, %v990_v27 }
 0x146   :  { %v1242_v48 = vpop.f32.mrf.mxu1  ;;  %v2586_v3 = vpop.f32.mrf.mxu0 }
 0x147   :  { %3668 = vst [vmem:[#allocation8_spill] sm:$0xff] %v3390_v58 }
 0x148   :  { %v2558_v17 = vpop.f32.mrf.mxu1  ;;  %v3392_v49 = vpop.f32.mrf.mxu0 }
 0x14a   :  { %v1245_v53 = vpop.f32.mrf.mxu1  ;;  %v3394_v7 = vpop.f32.mrf.mxu0 }
 0x14c   :  { %v2561_v22 = vpop.f32.mrf.mxu1  ;;  %v3396_v56 = vpop.f32.mrf.mxu0 }
 0x14e   :  { %v1258_v63 = vpop.f32.mrf.mxu1  ;;  %v3398_v13 = vpop.f32.mrf.mxu0 }
 0x150   :  { %v2562_v26 = vpop.f32.mrf.mxu1  ;;  %v3400_v16 = vpop.f32.mrf.mxu0 }
 0x152   :  { %v3402_v18 = vpop.f32.mrf.mxu1  ;;  %v3404_v15 = vpop.f32.mrf.mxu0 }
 0x154   :  { %v3406_v14 = vpop.f32.mrf.mxu1  ;;  %v3408_v24 = vpop.f32.mrf.mxu0 }
 0x156   :  { %v3410_v11 = vpop.f32.mrf.mxu1  ;;  %v3412_v39 = vpop.f32.mrf.mxu0 }
 0x158   :  { %v3414_v8 = vpop.f32.mrf.mxu1  ;;  %v3416_v4 = vpop.f32.mrf.mxu0 }
 0x15a   :  { %v3418_v57 = vpop.f32.mrf.mxu1  ;;  %v3420_v29 = vpop.f32.mrf.mxu0 }
 0x15c   :  { %v3422_v32 = vpop.f32.mrf.mxu1  ;;  %v3424_v1 = vpop.f32.mrf.mxu0 }
 0x15e   :  { %v3426_v36 = vpop.f32.mrf.mxu1  ;;  %v3428_v41 = vpop.f32.mrf.mxu0 }
 0x160   :  { %v3430_v44 = vpop.f32.mrf.mxu1  ;;  %v3432_v45 = vpop.f32.mrf.mxu0 }
 0x162   :  { %v3434_v12 = vpop.f32.mrf.mxu1  ;;  %v3436_v50 = vpop.f32.mrf.mxu0 }
 0x163   :  { %3669 = vst [vmem:[#allocation9_spill] sm:$0xff] %v3436_v50 }
 0x164   :  { %v3438_v10 = vpop.f32.mrf.mxu1  ;;  %v3440_v21 = vpop.f32.mrf.mxu0 }
 0x165   :  { %3670 = vst [vmem:[#allocation10_spill] sm:$0xff] %v3440_v21  ;;  %v1339_v21 = vadd.f32 %v2557_v2, %v3321_v20  ;;  %v3475_v20 = vld [vmem:[%s3658_s3] ss:$0 sm:$0xff] }
 0x166   :  { %v3442_v55 = vpop.f32.mrf.mxu1  ;;  %v3444_v42 = vpop.f32.mrf.mxu0 }
 0x167   :  { %3671 = vst [vmem:[#allocation11_spill] sm:$0xff] %v3442_v55  ;;  %3672 = vst [vmem:[#allocation12_spill] sm:$0xff] %v3444_v42 }
 0x168   :  { %v3446_v51 = vpop.f32.mrf.mxu1  ;;  %v3448_v59 = vpop.f32.mrf.mxu0 }
 0x169   :  { %3673 = vst [vmem:[#allocation13_spill] sm:$0xff] %v3446_v51  ;;  %3674 = vst [vmem:[#allocation14_spill] sm:$0xff] %v3448_v59  ;;  %v1337_v59 = vadd.f32 %v1242_v48, %v3324_v25 }
 0x16a   :  { %v3450_v27 = vpop.f32.mrf.mxu1  ;;  %v3452_v58 = vpop.f32.mrf.mxu0 }
 0x16b   :  { %3675 = vst [vmem:[#allocation15_spill] sm:$0xff] %v3450_v27  ;;  %3676 = vst [vmem:[#allocation16_spill] sm:$0xff] %v3452_v58  ;;  %v1513_v58 = vadd.f32 %v2585_v61, %v1339_v21  ;;  %v1511_v55 = vadd.f32 %v1416_v0, %v1337_v59  ;;  %v1343_v61 = vadd.f32 %v2561_v22, %v3333_v23 }
 0x16c   :  { %v3454_v52 = vpop.f32.mrf.mxu1  ;;  %v3456_v37 = vpop.f32.mrf.mxu0 }
 0x16d   :  { %3677 = vst [vmem:[#allocation17_spill] sm:$0xff] %v3454_v52  ;;  %3678 = vst [vmem:[#allocation18_spill] sm:$0xff] %v3456_v37  ;;  %v1340_v52 = vadd.f32 %v2558_v17, %v3327_v28  ;;  %v1341_v28 = vadd.f32 %v1258_v63, %v3336_v9  ;;  %v1517_v23 = vadd.f32 %v3394_v7, %v1343_v61 }
 0x16e   :  { %v3458_v62 = vpop.f32.mrf.mxu1  ;;  %v3460_v47 = vpop.f32.mrf.mxu0 }
 0x16f   :  { %3679 = vst [vmem:[#allocation19_spill] sm:$0xff] %v3458_v62  ;;  %3680 = vst [vmem:[#allocation20_spill] sm:$0xff] %v3460_v47  ;;  %v1338_v62 = vadd.f32 %v1245_v53, %v3330_v35  ;;  %v1514_v25 = vadd.f32 %v2586_v3, %v1340_v52  ;;  %v1515_v9 = vadd.f32 %v3396_v56, %v1341_v28 }
 0x170   :  { %v3463_v19 = vpop.f32.mrf.mxu1  ;;  %v3465_v42 = vpop.f32.mrf.mxu0 }
 0x171   :  { %3681 = vst [vmem:[#allocation21_spill] sm:$0xff] %v3463_v19  ;;  %3682 = vst [vmem:[#allocation22_spill] sm:$0xff] %v3465_v42  ;;  %v1512_v0 = vadd.f32 %v3392_v49, %v1338_v62  ;;  %v1342_v62 = vadd.f32 %v3402_v18, %v3342_v43 }
 0x172   :  { %v3468_v51 = vpop.f32.mrf.mxu1  ;;  %v2641_v27 = vpop.f32.mrf.mxu0 }
 0x173   :  { %3683 = vst [vmem:[#allocation23_spill] sm:$0xff] %v3468_v51 }
 0x174   :  { %v2613_v50 = vpop.f32.mrf.mxu1  ;;  %v1783_v37 = vpop.f32.mrf.mxu0 }
 0x175   :  { %v1702_v47 = vadd.f32 %v2613_v50, %v1513_v58  ;;  %v1344_v50 = vadd.f32 %v2562_v26, %v3339_v38 }
 0x176   :  { %v1605_v2 = vpop.f32.mrf.mxu1  ;;  %v2642_v42 = vpop.f32.mrf.mxu0 }
 0x177   :  { %v1880_v48 = vadd.f32 %v2641_v27, %v1702_v47  ;;  %v1700_v51 = vadd.f32 %v1605_v2, %v1511_v55  ;;  %v1518_v55 = vadd.f32 %v3398_v13, %v1344_v50  ;;  %v1516_v2 = vadd.f32 %v3400_v16, %v1342_v62 }
 0x178   :  { %v2614_v17 = vpop.f32.mrf.mxu1  ;;  %v1786_v21 = vpop.f32.mrf.mxu0  ;;  %v1348_v16 = vadd.f32 %v3414_v8, %v3351_v54 }
 0x179   :  { %v1911_v35 = vadd.f32 %v3475_v20, %v1880_v48  ;;  %v1878_v58 = vadd.f32 %v1783_v37, %v1700_v51  ;;  %v1703_v53 = vadd.f32 %v2614_v17, %v1514_v25 }
 0x17a   :  { %v1608_v59 = vpop.f32.mrf.mxu1  ;;  %v2645_v19 = vpop.f32.mrf.mxu0 }
 0x17b   :  { %v1935_v46 = vmax.f32 %v1911_v35, 0.0  ;;  %v1909_v47 = vadd.f32 %v3475_v20, %v1878_v58  ;;  %v1881_v52 = vadd.f32 %v2642_v42, %v1703_v53  ;;  %v1701_v3 = vadd.f32 %v1608_v59, %v1512_v0 }
 0x17c   :  { %v2617_v49 = vpop.f32.mrf.mxu1  ;;  %v1799_v37 = vpop.f32.mrf.mxu0  ;;  %v1347_v42 = vadd.f32 %v3406_v14, %v3345_v33 }
 0x17d   :  { %v2263_v22 = vpack.c.bf16 %v1935_v46, %v1935_v46  ;;  %v1933_v63 = vmax.f32 %v1909_v47, 0.0  ;;  %v1912_v38 = vadd.f32 %v3475_v20, %v1881_v52  ;;  %v1879_v26 = vadd.f32 %v1786_v21, %v1701_v3 }
 0x17e   :  { %v1706_v51 = vadd.f32 %v2617_v49, %v1517_v23  ;;  %v1621_v7 = vpop.f32.mrf.mxu1  ;;  %v2646_v27 = vpop.f32.mrf.mxu0  ;;  %v1521_v17 = vadd.f32 %v3404_v15, %v1347_v42  ;;  %v1345_v21 = vadd.f32 %v3410_v11, %v3348_v31  ;;  %v1346_v31 = vadd.f32 %v3418_v57, %v3354_v60 }
 0x17f   :  { %2056 = vst.msk [vmem:[%s3659_s4 + $0x8] sm:$0xf] %vm2053_vm6, %v2263_v22  ;;  %v2261_v43 = vpack.c.bf16 %v1933_v63, %v1933_v63  ;;  %v1936_v56 = vmax.f32 %v1912_v38, 0.0  ;;  %v1910_v46 = vadd.f32 %v3475_v20, %v1879_v26  ;;  %v1704_v18 = vadd.f32 %v1621_v7, %v1515_v9 }
 0x180   :  { %v1884_v25 = vadd.f32 %v2645_v19, %v1706_v51  ;;  %v2618_v13 = vpop.f32.mrf.mxu1  ;;  %v1802_v48 = vpop.f32.mrf.mxu0  ;;  %v1519_v23 = vadd.f32 %v3408_v24, %v1345_v21  ;;  %v1522_v9 = vadd.f32 %v3412_v39, %v1348_v16  ;;  %v1351_v60 = vadd.f32 %v3422_v32, %v3357_v5 }
 0x181   :  { %2054 = vst.msk [vmem:[%s3659_s4] sm:$0xf] %vm2053_vm6, %v2261_v43  ;;  %v2264_v33 = vpack.c.bf16 %v1936_v56, %v1936_v56  ;;  %v1934_v14 = vmax.f32 %v1910_v46, 0.0  ;;  %v1882_v61 = vadd.f32 %v1799_v37, %v1704_v18  ;;  %v1707_v28 = vadd.f32 %v2618_v13, %v1518_v55 }
 0x182   :  { %v1915_v19 = vadd.f32 %v3475_v20, %v1884_v25  ;;  %v1624_v0 = vpop.f32.mrf.mxu1  ;;  %v2649_v35 = vpop.f32.mrf.mxu0  ;;  %v1520_v26 = vadd.f32 %v3416_v4, %v1346_v31  ;;  %v1349_v55 = vadd.f32 %v3426_v36, %v3360_v6  ;;  %v1525_v6 = vadd.f32 %v3420_v29, %v1351_v60 }
 0x183   :  { %2057 = vst.msk [vmem:[%s3659_s4 + $0xc] sm:$0xf] %vm2053_vm6, %v2264_v33  ;;  %v2262_v58 = vpack.c.bf16 %v1934_v14, %v1934_v14  ;;  %v1913_v53 = vadd.f32 %v3475_v20, %v1882_v61  ;;  %v1885_v50 = vadd.f32 %v2646_v27, %v1707_v28  ;;  %v1705_v15 = vadd.f32 %v1624_v0, %v1516_v2 }
 0x184   :  { %v1939_v11 = vmax.f32 %v1915_v19, 0.0  ;;  %v2621_v59 = vpop.f32.mrf.mxu1  ;;  %v1815_v54 = vpop.f32.mrf.mxu0  ;;  %v1523_v2 = vadd.f32 %v3424_v1, %v1349_v55  ;;  %v1352_v25 = vadd.f32 %v3430_v44, %v3363_v34  ;;  %v1350_v29 = vadd.f32 %v3434_v12, %v3366_v30 }
 0x185   :  { %2055 = vst.msk [vmem:[%s3659_s4 + $0x4] sm:$0xf] %vm2053_vm6, %v2262_v58  ;;  %v1937_v8 = vmax.f32 %v1913_v53, 0.0  ;;  %v1916_v47 = vadd.f32 %v3475_v20, %v1885_v50  ;;  %v1883_v52 = vadd.f32 %v1802_v48, %v1705_v15  ;;  %v1710_v3 = vadd.f32 %v2621_v59, %v1521_v17  ;;  %v3684_v58 = vld [vmem:[#allocation2_spill] sm:$0xff]  ;;  %v3685_v53 = vld [vmem:[#allocation11_spill] sm:$0xff] }
 0x186   :  { %v2267_v57 = vpack.c.bf16 %v1939_v11, %v1939_v11  ;;  %v1637_v62 = vpop.f32.mrf.mxu1  ;;  %v2650_v49 = vpop.f32.mrf.mxu0  ;;  %v1355_v34 = vadd.f32 %v3438_v10, %v3369_v40  ;;  %v1526_v0 = vadd.f32 %v3428_v41, %v1352_v25  ;;  %v1353_v40 = vadd.f32 %v3685_v53, %v3684_v58 }
 0x187   :  { %v2265_v37 = vpack.c.bf16 %v1937_v8, %v1937_v8  ;;  %v1940_v22 = vmax.f32 %v1916_v47, 0.0  ;;  %v1914_v63 = vadd.f32 %v3475_v20, %v1883_v52  ;;  %v1888_v38 = vadd.f32 %v2649_v35, %v1710_v3  ;;  %v3686_v8 = vld [vmem:[#allocation9_spill] sm:$0xff]  ;;  %v3687_v52 = vld [vmem:[#allocation3_spill] sm:$0xff] }
 0x188   :  { %2060 = vst.msk [vmem:[%s3659_s4 + $0x18] sm:$0xf] %vm2053_vm6, %v2267_v57  ;;  %v1708_v24 = vadd.f32 %v1637_v62, %v1519_v23  ;;  %v2622_v5 = vpop.f32.mrf.mxu1  ;;  %v1818_v39 = vpop.f32.mrf.mxu0  ;;  %v1524_v35 = vadd.f32 %v3432_v45, %v1350_v29  ;;  %v1529_v47 = vadd.f32 %v3686_v8, %v1355_v34  ;;  %v3688_v3 = vld [vmem:[#allocation13_spill] sm:$0xff]  ;;  %v3703_v8 = vld [vmem:[#allocation23_spill] sm:$0xff] }
 0x189   :  { %2058 = vst.msk [vmem:[%s3659_s4 + $0x10] sm:$0xf] %vm2053_vm6, %v2265_v37  ;;  %v2268_v32 = vpack.c.bf16 %v1940_v22, %v1940_v22  ;;  %v1938_v42 = vmax.f32 %v1914_v63, 0.0  ;;  %v1919_v4 = vadd.f32 %v3475_v20, %v1888_v38  ;;  %v1711_v51 = vadd.f32 %v2622_v5, %v1522_v9  ;;  %v3689_v37 = vld [vmem:[#allocation10_spill] sm:$0xff] }
 0x18a   :  { %v1886_v36 = vadd.f32 %v1815_v54, %v1708_v24  ;;  %v1640_v7 = vpop.f32.mrf.mxu1  ;;  %v2653_v27 = vpop.f32.mrf.mxu0  ;;  %v1356_v23 = vadd.f32 %v3688_v3, %v3687_v52  ;;  %v1527_v22 = vadd.f32 %v3689_v37, %v1353_v40 }
 0x18b   :  { %2061 = vst.msk [vmem:[%s3659_s4 + $0x1c] sm:$0xf] %vm2053_vm6, %v2268_v32  ;;  %v2266_v43 = vpack.c.bf16 %v1938_v42, %v1938_v42  ;;  %v1943_v56 = vmax.f32 %v1919_v4, 0.0  ;;  %v1889_v46 = vadd.f32 %v2650_v49, %v1711_v51  ;;  %v1709_v18 = vadd.f32 %v1640_v7, %v1520_v26  ;;  %v3690_v32 = vld [vmem:[#allocation12_spill] sm:$0xff]  ;;  %v3692_v51 = vld [vmem:[#allocation15_spill] sm:$0xff]  ;;  %v3694_v7 = vld [vmem:[#allocation17_spill] sm:$0xff] }
 0x18c   :  { %v1917_v13 = vadd.f32 %v3475_v20, %v1886_v36  ;;  %v2625_v48 = vpop.f32.mrf.mxu1  ;;  %v1831_v33 = vpop.f32.mrf.mxu0  ;;  %v1530_v42 = vadd.f32 %v3690_v32, %v1356_v23  ;;  %v3691_v4 = vld [vmem:[#allocation4_spill] sm:$0xff]  ;;  %v3693_v36 = vld [vmem:[#allocation5_spill] sm:$0xff] }
 0x18d   :  { %2059 = vst.msk [vmem:[%s3659_s4 + $0x14] sm:$0xf] %vm2053_vm6, %v2266_v43  ;;  %v2271_v14 = vpack.c.bf16 %v1943_v56, %v1943_v56  ;;  %v1920_v61 = vadd.f32 %v3475_v20, %v1889_v46  ;;  %v1887_v28 = vadd.f32 %v1818_v39, %v1709_v18  ;;  %v1714_v1 = vadd.f32 %v2625_v48, %v1525_v6  ;;  %v3696_v48 = vld [vmem:[#allocation19_spill] sm:$0xff] }
 0x18e   :  { %v1941_v44 = vmax.f32 %v1917_v13, 0.0  ;;  %v1653_v17 = vpop.f32.mrf.mxu1  ;;  %v2654_v30 = vpop.f32.mrf.mxu0  ;;  %v1354_v6 = vadd.f32 %v3692_v51, %v3691_v4  ;;  %v3695_v13 = vld [vmem:[#allocation6_spill] sm:$0xff] }
 0x18f   :  { %2064 = vst.msk [vmem:[%s3659_s4 + $0x28] sm:$0xf] %vm2053_vm6, %v2271_v14  ;;  %v1944_v12 = vmax.f32 %v1920_v61, 0.0  ;;  %v1918_v21 = vadd.f32 %v3475_v20, %v1887_v28  ;;  %v1892_v16 = vadd.f32 %v2653_v27, %v1714_v1  ;;  %v1712_v19 = vadd.f32 %v1653_v17, %v1523_v2 }
 0x190   :  { %v2269_v10 = vpack.c.bf16 %v1941_v44, %v1941_v44  ;;  %v2626_v50 = vpop.f32.mrf.mxu1  ;;  %v1834_v15 = vpop.f32.mrf.mxu0  ;;  %v1359_v27 = vadd.f32 %v3694_v7, %v3693_v36 }
 0x191   :  { %v2272_v31 = vpack.c.bf16 %v1944_v12, %v1944_v12  ;;  %v1942_v11 = vmax.f32 %v1918_v21, 0.0  ;;  %v1923_v59 = vadd.f32 %v3475_v20, %v1892_v16  ;;  %v1890_v54 = vadd.f32 %v1831_v33, %v1712_v19  ;;  %v3698_v21 = vld [vmem:[#allocation16_spill] sm:$0xff]  ;;  %v3699_v19 = vld [vmem:[#allocation7_spill] sm:$0xff] }
 0x192   :  { %2062 = vst.msk [vmem:[%s3659_s4 + $0x20] sm:$0xf] %vm2053_vm6, %v2269_v10  ;;  %v1715_v41 = vadd.f32 %v2626_v50, %v1526_v0  ;;  %v1656_v45 = vpop.f32.mrf.mxu1  ;;  %v2657_v9 = vpop.f32.mrf.mxu0  ;;  %v1357_v33 = vadd.f32 %v3696_v48, %v3695_v13  ;;  %v1533_v16 = vadd.f32 %v3698_v21, %v1359_v27  ;;  %v3700_v0 = vld [vmem:[#allocation21_spill] sm:$0xff] }
 0x193   :  { %2065 = vst.msk [vmem:[%s3659_s4 + $0x2c] sm:$0xf] %vm2053_vm6, %v2272_v31  ;;  %v2270_v60 = vpack.c.bf16 %v1942_v11, %v1942_v11  ;;  %v1947_v57 = vmax.f32 %v1923_v59, 0.0  ;;  %v1921_v62 = vadd.f32 %v3475_v20, %v1890_v54  ;;  %v1713_v49 = vadd.f32 %v1656_v45, %v1524_v35  ;;  %v3701_v11 = vld [vmem:[#allocation18_spill] sm:$0xff]  ;;  %v3702_v54 = vld [vmem:[#allocation8_spill] sm:$0xff] }
 0x194   :  { %v1893_v63 = vadd.f32 %v2654_v30, %v1715_v41  ;;  %v2629_v38 = vpop.f32.mrf.mxu1  ;;  %v1847_v26 = vpop.f32.mrf.mxu0  ;;  %v3697_v30 = vld [vmem:[#allocation14_spill] sm:$0xff]  ;;  %v1360_v35 = vadd.f32 %v3700_v0, %v3699_v19  ;;  %v1531_v59 = vadd.f32 %v3701_v11, %v1357_v33 }
 0x195   :  { %2063 = vst.msk [vmem:[%s3659_s4 + $0x24] sm:$0xf] %vm2053_vm6, %v2270_v60  ;;  %v2275_v55 = vpack.c.bf16 %v1947_v57, %v1947_v57  ;;  %v1945_v24 = vmax.f32 %v1921_v62, 0.0  ;;  %v1891_v5 = vadd.f32 %v1834_v15, %v1713_v49  ;;  %v1718_v39 = vadd.f32 %v2629_v38, %v1529_v47  ;;  %v3704_v57 = vld [vmem:[#allocation20_spill] sm:$0xff] }
 0x196   :  { %v1924_v43 = vadd.f32 %v3475_v20, %v1893_v63  ;;  %v1669_v56 = vpop.f32.mrf.mxu1  ;;  %v2658_v46 = vpop.f32.mrf.mxu0  ;;  %v1528_v12 = vadd.f32 %v3697_v30, %v1354_v6  ;;  %v1358_v47 = vadd.f32 %v3703_v8, %v3702_v54  ;;  %v1534_v62 = vadd.f32 %v3704_v57, %v1360_v35 }
 0x197   :  { %2068 = vst.msk [vmem:[%s3659_s4 + $0x38] sm:$0xf] %vm2053_vm6, %v2275_v55  ;;  %v2273_v18 = vpack.c.bf16 %v1945_v24, %v1945_v24  ;;  %v1922_v2 = vadd.f32 %v3475_v20, %v1891_v5  ;;  %v1896_v25 = vadd.f32 %v2657_v9, %v1718_v39  ;;  %v1716_v29 = vadd.f32 %v1669_v56, %v1527_v22  ;;  %v3705_v55 = vld [vmem:[#allocation22_spill] sm:$0xff] }
 0x198   :  { %v1948_v14 = vmax.f32 %v1924_v43, 0.0  ;;  %v2630_v61 = vpop.f32.mrf.mxu1  ;;  %v1850_v28 = vpop.f32.mrf.mxu0  ;;  %v1532_v24 = vadd.f32 %v3705_v55, %v1358_v47 }
 0x199   :  { %2066 = vst.msk [vmem:[%s3659_s4 + $0x30] sm:$0xf] %vm2053_vm6, %v2273_v18  ;;  %v1946_v1 = vmax.f32 %v1922_v2, 0.0  ;;  %v1927_v34 = vadd.f32 %v3475_v20, %v1896_v25  ;;  %v1894_v44 = vadd.f32 %v1847_v26, %v1716_v29  ;;  %v1719_v17 = vadd.f32 %v2630_v61, %v1530_v42 }
 0x19a   :  { %v2276_v58 = vpack.c.bf16 %v1948_v14, %v1948_v14  ;;  %v1672_v53 = vpop.f32.mrf.mxu1  ;;  %v2661_v40 = vpop.f32.mrf.mxu0 }
 0x19b   :  { %v2274_v10 = vpack.c.bf16 %v1946_v1, %v1946_v1  ;;  %v1951_v50 = vmax.f32 %v1927_v34, 0.0  ;;  %v1925_v15 = vadd.f32 %v3475_v20, %v1894_v44  ;;  %v1897_v31 = vadd.f32 %v2658_v46, %v1719_v17 }
 0x19c   :  { %2069 = vst.msk [vmem:[%s3659_s4 + $0x3c] sm:$0xf] %vm2053_vm6, %v2276_v58  ;;  %v1717_v52 = vadd.f32 %v1672_v53, %v1528_v12  ;;  %v2633_v3 = vpop.f32.mrf.mxu1  ;;  %v1863_v23 = vpop.f32.mrf.mxu0 }
 0x19d   :  { %2067 = vst.msk [vmem:[%s3659_s4 + $0x34] sm:$0xf] %vm2053_vm6, %v2274_v10  ;;  %v2279_v41 = vpack.c.bf16 %v1951_v50, %v1951_v50  ;;  %v1949_v45 = vmax.f32 %v1925_v15, 0.0  ;;  %v1928_v9 = vadd.f32 %v3475_v20, %v1897_v31  ;;  %v1722_v60 = vadd.f32 %v2633_v3, %v1533_v16 }
 0x19e   :  { %v1895_v49 = vadd.f32 %v1850_v28, %v1717_v52  ;;  %v1685_v37 = vpop.f32.mrf.mxu1  ;;  %v2662_v32 = vpop.f32.mrf.mxu0 }
 0x19f   :  { %2072 = vst.msk [vmem:[%s3659_s4 + $0x48] sm:$0xf] %vm2053_vm6, %v2279_v41  ;;  %v2277_v22 = vpack.c.bf16 %v1949_v45, %v1949_v45  ;;  %v1952_v63 = vmax.f32 %v1928_v9, 0.0  ;;  %v1900_v38 = vadd.f32 %v2661_v40, %v1722_v60  ;;  %v1720_v26 = vadd.f32 %v1685_v37, %v1531_v59 }
 0x1a0   :  { %v1926_v5 = vadd.f32 %v3475_v20, %v1895_v49  ;;  %v2634_v39 = vpop.f32.mrf.mxu1  ;;  %v1866_v2 = vpop.f32.mrf.mxu0 }
 0x1a1   :  { %2070 = vst.msk [vmem:[%s3659_s4 + $0x40] sm:$0xf] %vm2053_vm6, %v2277_v22  ;;  %v2280_v42 = vpack.c.bf16 %v1952_v63, %v1952_v63  ;;  %v1931_v4 = vadd.f32 %v3475_v20, %v1900_v38  ;;  %v1898_v51 = vadd.f32 %v1863_v23, %v1720_v26  ;;  %v1723_v6 = vadd.f32 %v2634_v39, %v1534_v62 }
 0x1a2   :  { %v1950_v36 = vmax.f32 %v1926_v5, 0.0  ;;  %v1688_v7 = vpop.f32.mrf.mxu1 }
 0x1a3   :  { %2073 = vst.msk [vmem:[%s3659_s4 + $0x4c] sm:$0xf] %vm2053_vm6, %v2280_v42  ;;  %v1955_v27 = vmax.f32 %v1931_v4, 0.0  ;;  %v1929_v43 = vadd.f32 %v3475_v20, %v1898_v51  ;;  %v1901_v56 = vadd.f32 %v2662_v32, %v1723_v6  ;;  %v1721_v46 = vadd.f32 %v1688_v7, %v1532_v24 }
 0x1a4   :  { %v2278_v18 = vpack.c.bf16 %v1950_v36, %v1950_v36 }
 0x1a5   :  { %v2283_v25 = vpack.c.bf16 %v1955_v27, %v1955_v27  ;;  %v1953_v29 = vmax.f32 %v1929_v43, 0.0  ;;  %v1932_v13 = vadd.f32 %v3475_v20, %v1901_v56  ;;  %v1899_v48 = vadd.f32 %v1866_v2, %v1721_v46 }
 0x1a6   :  { %2071 = vst.msk [vmem:[%s3659_s4 + $0x44] sm:$0xf] %vm2053_vm6, %v2278_v18 }
 0x1a7   :  { %2076 = vst.msk [vmem:[%s3659_s4 + $0x58] sm:$0xf] %vm2053_vm6, %v2283_v25  ;;  %v2281_v33 = vpack.c.bf16 %v1953_v29, %v1953_v29  ;;  %v1956_v14 = vmax.f32 %v1932_v13, 0.0  ;;  %v1930_v61 = vadd.f32 %v3475_v20, %v1899_v48 }
 0x1a9   :  { %2074 = vst.msk [vmem:[%s3659_s4 + $0x50] sm:$0xf] %vm2053_vm6, %v2281_v33  ;;  %v2284_v28 = vpack.c.bf16 %v1956_v14, %v1956_v14  ;;  %v1954_v1 = vmax.f32 %v1930_v61, 0.0 }
 0x1ab   :  { %2077 = vst.msk [vmem:[%s3659_s4 + $0x5c] sm:$0xf] %vm2053_vm6, %v2284_v28  ;;  %v2282_v34 = vpack.c.bf16 %v1954_v1, %v1954_v1 }
 0x1ad   :  { %2075 = vst.msk [vmem:[%s3659_s4 + $0x54] sm:$0xf] %vm2053_vm6, %v2282_v34 }

</bundles_post_ra>
